<compile_context>
chip_gen: v7x
topology: tpu7x:2x2x1
jax: 0.10.0
libtpu: 0.0.40
codegen_flags: <defaults>
</compile_context>

<pallas_src>
import functools

import numpy as np
import jax
import jax.numpy as jnp
from jax.experimental import pallas as pl
from jax.experimental.pallas import tpu as pltpu


# ----------------------------------------------------------------------------
# compiler params (generation-aware VMEM budget)
# ----------------------------------------------------------------------------
def _vmem_limit_bytes():
    phys = 64 * 1024 * 1024                      # conservative fallback (v7x)
    try:
        phys = int(getattr(pltpu.get_tpu_info(), "vmem_capacity_bytes", phys))
    except Exception:
        pass
    # leave headroom for compiler scratch; cap at ~100 MiB on 128 MiB parts
    return int(min(max(phys - 16 * 1024 * 1024, 16 * 1024 * 1024),
                   100 * 1024 * 1024))


def _compiler_params():
    return pltpu.CompilerParams(
        dimension_semantics=("parallel",),
        vmem_limit_bytes=_vmem_limit_bytes(),
    )


# ----------------------------------------------------------------------------
# Kernel 1: ConvTranspose2d(k=2, s=2) -- one lane-dense matmul per image.
#   x: (1, H, W*Cin)   w: (W*Cin, 2*2W*Co) columns ordered (kh, 2w+kw, co)
#   o: (1, H, 2*2W*Co) -> wrapper reshape to (N, 2H, 2W, Co) is metadata-only.
# ----------------------------------------------------------------------------
def _up_kernel(x_ref, w_ref, b_ref, o_ref):
    o_ref[0] = (jnp.dot(x_ref[0], w_ref[...], preferred_element_type=jnp.float32)
                + b_ref[...])


# ----------------------------------------------------------------------------
# Shared conv helpers (run inside the conv kernels)
# ----------------------------------------------------------------------------
def _conv_taps(x, w_ref):
    """3x3 conv of a lane-dense (H, W*Cin) slab via 3 banded dy-tap matmuls.

    dx taps + padding=1 along W live in the band structure of w_ref[u];
    the dy halo is two in-kernel zero rows (in-kernel padding, no HBM pass).
    """
    hc, lane = x.shape
    z = jnp.zeros((1, lane), jnp.float32)
    xz = jnp.concatenate([z, x, z], axis=0)                       # (hc+2, lane)
    acc = jnp.dot(xz[0:hc], w_ref[0], preferred_element_type=jnp.float32)
    acc = acc + jnp.dot(xz[1:hc + 1], w_ref[1], preferred_element_type=jnp.float32)
    acc = acc + jnp.dot(xz[2:hc + 2], w_ref[2], preferred_element_type=jnp.float32)
    return acc


def _tile_stats(acc, p, pt, inv_count):
    """Per-tile per-channel (sum, centered second moment) of a lane-dense slab."""
    col = jnp.sum(acc, axis=0, keepdims=True)                         # (1, W*C)
    s1 = jnp.dot(col, p, preferred_element_type=jnp.float32)          # (1, C)
    mu_lane = jnp.dot(s1 * inv_count, pt,
                      preferred_element_type=jnp.float32)             # (1, W*C)
    d = acc - mu_lane
    m2 = jnp.dot(jnp.sum(d * d, axis=0, keepdims=True), p,
                 preferred_element_type=jnp.float32)                  # (1, C)
    return s1, m2


# ----------------------------------------------------------------------------
# Kernel 2: conv1 -- channel concat fused (two operands), raw output + stats.
# ----------------------------------------------------------------------------
def _conv_cat_kernel(a_ref, b_ref, wa_ref, wb_ref, p_ref, pt_ref,
                     y_ref, s1_ref, m2_ref, *, inv_count):
    acc = _conv_taps(a_ref[0], wa_ref) + _conv_taps(b_ref[0], wb_ref)
    y_ref[0] = acc
    s1, m2 = _tile_stats(acc, p_ref[...], pt_ref[...], inv_count)
    s1_ref[0] = s1
    m2_ref[0] = m2


# ----------------------------------------------------------------------------
# Kernel 3: conv2 -- BN1+ReLU applied to the raw conv1 tile in-kernel,
#                    then the banded 3x3 conv, raw output + stats.
# ----------------------------------------------------------------------------
def _conv_act_kernel(x_ref, sc_ref, sh_ref, w_ref, p_ref, pt_ref,
                     y_ref, s1_ref, m2_ref, *, inv_count):
    x = jnp.maximum(x_ref[0] * sc_ref[...] + sh_ref[...], 0.0)
    acc = _conv_taps(x, w_ref)
    y_ref[0] = acc
    s1, m2 = _tile_stats(acc, p_ref[...], pt_ref[...], inv_count)
    s1_ref[0] = s1
    m2_ref[0] = m2


# ----------------------------------------------------------------------------
# Weight / selector preparation (tiny, XLA; kernels see only resident slabs)
# ----------------------------------------------------------------------------
def _band_selector(wc):
    wi = np.arange(wc)[:, None, None]
    v = np.arange(3)[None, :, None]
    wo = np.arange(wc)[None, None, :]
    return (wi == wo + v - 1).astype(np.float32)          # (wc, 3, wc)


def _banded_conv_weight(w_pt, wc):
    """(Cout, Cin, 3, 3) PyTorch conv weight -> (3, wc*Cin, wc*Cout) banded.

    TODO(synk): weight is O(wc^2*Cin*Cout); for large wc switch to W-band
    tiling / per-tap block-diagonal weights.
    """
    cout, cin = w_pt.shape[0], w_pt.shape[1]
    sel = jnp.asarray(_band_selector(wc))
    band = jnp.einsum("avb,oiuv->uaibo", sel, w_pt.astype(jnp.float32))
    return band.reshape(3, wc * cin, wc * cout)


def _convtranspose_fat_weight(w_pt, w):
    """(Cin, Co, 2, 2) -> (w*Cin, 2*2w*Co) with columns ordered (kh, 2w+kw, co)."""
    cin, co = w_pt.shape[0], w_pt.shape[1]
    wi = np.arange(w)[:, None, None]
    wo2 = np.arange(2 * w)[None, :, None]
    kw = np.arange(2)[None, None, :]
    sel = jnp.asarray((wo2 == 2 * wi + kw).astype(np.float32))    # (w, 2w, 2)
    fat = jnp.einsum("abk,iohk->aihbo", sel, w_pt.astype(jnp.float32))
    return fat.reshape(w * cin, 2 * 2 * w * co)


def _channel_selectors(wc, c):
    p = np.tile(np.eye(c, dtype=np.float32), (wc, 1))     # (wc*c, c)
    return jnp.asarray(p), jnp.asarray(p.T)


def _finalize_bn(s1, m2, count, gamma, beta, eps=1e-5):
    """Combine per-tile (sum, centered M2) partials -> BN scale/shift fold."""
    g = s1.shape[0]
    m_total = g * count
    total = jnp.sum(s1, axis=(0, 1))                      # (C,)
    mean = total / m_total
    mu_t = s1[:, 0, :] / count                            # (G, C)
    m2_total = (jnp.sum(m2, axis=(0, 1))
                + count * jnp.sum((mu_t - mean) ** 2, axis=0))
    var = m2_total / m_total                              # biased (BN training)
    scale = gamma.astype(jnp.float32) * jax.lax.rsqrt(var + eps)
    shift = beta.astype(jnp.float32) - mean * scale
    return scale, shift


# ----------------------------------------------------------------------------
# pallas_call wrappers
# ----------------------------------------------------------------------------
def _upsample(x_l, w_fat, b_lane):
    n, h, lane_in = x_l.shape
    lane_out = w_fat.shape[1]
    return pl.pallas_call(
        _up_kernel,
        grid=(n,),
        in_specs=[
            pl.BlockSpec((1, h, lane_in), lambda g: (g, 0, 0)),
            pl.BlockSpec((lane_in, lane_out), lambda g: (0, 0)),   # resident
            pl.BlockSpec((1, lane_out), lambda g: (0, 0)),
        ],
        out_specs=pl.BlockSpec((1, h, lane_out), lambda g: (g, 0, 0)),
        out_shape=jax.ShapeDtypeStruct((n, h, lane_out), jnp.float32),
        compiler_params=_compiler_params(),
    )(x_l, w_fat, b_lane)


def _run_conv(kernel, inputs, in_specs, n, hc, lane_out, cout):
    return pl.pallas_call(
        kernel,
        grid=(n,),
        in_specs=in_specs,
        out_specs=[
            pl.BlockSpec((1, hc, lane_out), lambda g: (g, 0, 0)),
            pl.BlockSpec((1, 1, cout), lambda g: (g, 0, 0)),
            pl.BlockSpec((1, 1, cout), lambda g: (g, 0, 0)),
        ],
        out_shape=[
            jax.ShapeDtypeStruct((n, hc, lane_out), jnp.float32),
            jax.ShapeDtypeStruct((n, 1, cout), jnp.float32),
            jax.ShapeDtypeStruct((n, 1, cout), jnp.float32),
        ],
        compiler_params=_compiler_params(),
    )(*inputs)


def _conv1(up_l, skip_l, wa, wb, p, pt, cout):
    n, hc, lane_a = up_l.shape
    lane_b = skip_l.shape[2]
    lane_out = wa.shape[2]
    inv_count = 1.0 / float(hc * (lane_out // cout))
    kernel = functools.partial(_conv_cat_kernel, inv_count=inv_count)
    in_specs = [
        pl.BlockSpec((1, hc, lane_a), lambda g: (g, 0, 0)),
        pl.BlockSpec((1, hc, lane_b), lambda g: (g, 0, 0)),
        pl.BlockSpec(wa.shape, lambda g: (0, 0, 0)),               # resident
        pl.BlockSpec(wb.shape, lambda g: (0, 0, 0)),
        pl.BlockSpec(p.shape, lambda g: (0, 0)),
        pl.BlockSpec(pt.shape, lambda g: (0, 0)),
    ]
    return _run_conv(kernel, (up_l, skip_l, wa, wb, p, pt),
                     in_specs, n, hc, lane_out, cout)


def _conv2(y1, sc_row, sh_row, w2b, p, pt, cout):
    n, hc, lane_in = y1.shape
    lane_out = w2b.shape[2]
    inv_count = 1.0 / float(hc * (lane_out // cout))
    kernel = functools.partial(_conv_act_kernel, inv_count=inv_count)
    in_specs = [
        pl.BlockSpec((1, hc, lane_in), lambda g: (g, 0, 0)),
        pl.BlockSpec(sc_row.shape, lambda g: (0, 0)),
        pl.BlockSpec(sh_row.shape, lambda g: (0, 0)),
        pl.BlockSpec(w2b.shape, lambda g: (0, 0, 0)),              # resident
        pl.BlockSpec(p.shape, lambda g: (0, 0)),
        pl.BlockSpec(pt.shape, lambda g: (0, 0)),
    ]
    return _run_conv(kernel, (y1, sc_row, sh_row, w2b, p, pt),
                     in_specs, n, hc, lane_out, cout)


# ----------------------------------------------------------------------------
# Bilinear interpolation matrix (PyTorch align_corners=False semantics)
# ----------------------------------------------------------------------------
def _interp_matrix(out_size, in_size):
    if out_size == in_size:
        return np.eye(out_size, dtype=np.float32)
    scale = in_size / out_size
    dst = np.arange(out_size, dtype=np.float64)
    src = np.maximum((dst + 0.5) * scale - 0.5, 0.0)
    i0 = np.clip(np.floor(src).astype(np.int64), 0, in_size - 1)
    i1 = np.minimum(i0 + 1, in_size - 1)
    l1 = src - i0
    l0 = 1.0 - l1
    m = np.zeros((out_size, in_size), dtype=np.float64)
    m[np.arange(out_size), i0] += l0
    m[np.arange(out_size), i1] += l1
    return m.astype(np.float32)


# ----------------------------------------------------------------------------
# DecoderBlock forward (wrapper accepts / returns NCHW like PyTorch)
# ----------------------------------------------------------------------------
def decoder_block_forward(params, inputs_nchw, skip_nchw):
    x = jnp.transpose(inputs_nchw, (0, 2, 3, 1)).astype(jnp.float32)    # NHWC
    skip = jnp.transpose(skip_nchw, (0, 2, 3, 1)).astype(jnp.float32)
    n, h, w, cin = x.shape
    co = params["up_w"].shape[1]
    ho, wo = skip.shape[1], skip.shape[2]

    # ConvTranspose2d(k=2, s=2): one lane-dense matmul per image; fat-weight
    # column order makes the sub-pixel interleave a metadata-only reshape.
    w_fat = _convtranspose_fat_weight(params["up_w"], w)
    b_lane = jnp.tile(params["up_b"].astype(jnp.float32), 2 * 2 * w).reshape(1, -1)
    up = _upsample(x.reshape(n, h, w * cin), w_fat, b_lane)   # (n, h, 2*2w*co)

    # Bilinear resize (align_corners=False) to the skip size; identity fast
    # path for the standard U-Net 2x case (no extra HBM pass).
    if (2 * h, 2 * w) == (ho, wo):
        up_l = up.reshape(n, ho, wo * co)                     # metadata only
    else:
        # TODO(synk): fold the interp matrices into conv1's banded weights to
        # avoid this extra XLA pass on the rare non-2x path.
        rh = jnp.asarray(_interp_matrix(ho, 2 * h))
        rw = jnp.asarray(_interp_matrix(wo, 2 * w))
        up4 = jnp.einsum("ph,qw,nhwc->npqc", rh, rw,
                         up.reshape(n, 2 * h, 2 * w, co))
        up_l = up4.reshape(n, ho, wo * co)

    skip_l = skip.reshape(n, ho, wo * co)                     # metadata only

    c1 = params["w1"].shape[0]
    c2 = params["w2"].shape[0]

    # conv1 (channel concat fused; b1 dropped: cancels vs. the batch mean)
    wa = _banded_conv_weight(params["w1"][:, :co], wo)
    wb = _banded_conv_weight(params["w1"][:, co:], wo)
    p1, pt1 = _channel_selectors(wo, c1)
    y1, s1, m21 = _conv1(up_l, skip_l, wa, wb, p1, pt1, c1)
    scale1, shift1 = _finalize_bn(s1, m21, ho * wo, params["g1"], params["bt1"])

    # conv2 (BN1+ReLU applied in-kernel to y1; b2 dropped likewise)
    w2b = _banded_conv_weight(params["w2"], wo)
    p2, pt2 = _channel_selectors(wo, c2)
    sc_row = jnp.tile(scale1, wo).reshape(1, wo * c1)
    sh_row = jnp.tile(shift1, wo).reshape(1, wo * c1)
    y2, s2, m22 = _conv2(y1, sc_row, sh_row, w2b, p2, pt2, c2)
    scale2, shift2 = _finalize_bn(s2, m22, ho * wo, params["g2"], params["bt2"])

    # Final BN2+ReLU fused by XLA into the NHWC->NCHW output transpose.
    out = jnp.maximum(y2.reshape(n, ho, wo, c2) * scale2 + shift2, 0.0)
    return jnp.transpose(out, (0, 3, 1, 2))


# ----------------------------------------------------------------------------
# Pure-JAX reference (XLA ops, full PyTorch semantics incl. conv biases)
# ----------------------------------------------------------------------------
def _reference(params, inputs_nchw, skip_nchw):
    x = jnp.transpose(inputs_nchw, (0, 2, 3, 1)).astype(jnp.float32)
    skip = jnp.transpose(skip_nchw, (0, 2, 3, 1)).astype(jnp.float32)
    n, h, w, _ = x.shape
    out_c = params["up_w"].shape[1]

    up = jnp.einsum("nhwi,iokl->nhkwlo", x, params["up_w"])
    up = up.reshape(n, 2 * h, 2 * w, out_c) + params["up_b"]
    rh = jnp.asarray(_interp_matrix(skip.shape[1], up.shape[1]))
    rw = jnp.asarray(_interp_matrix(skip.shape[2], up.shape[2]))
    up = jnp.einsum("ph,qw,nhwc->npqc", rh, rw, up)
    xc = jnp.concatenate([up, skip], axis=-1)

    def cbr(z, w_pt, b, g, bt):
        wh = jnp.transpose(w_pt, (2, 3, 1, 0))  # HWIO
        y = jax.lax.conv_general_dilated(
            z, wh, (1, 1), "SAME", dimension_numbers=("NHWC", "HWIO", "NHWC")
        ) + b
        mu = jnp.mean(y, axis=(0, 1, 2), keepdims=True)
        var = jnp.mean((y - mu) ** 2, axis=(0, 1, 2), keepdims=True)
        return jnp.maximum((y - mu) * jax.lax.rsqrt(var + 1e-5) * g + bt, 0.0)

    y = cbr(xc, params["w1"], params["b1"], params["g1"], params["bt1"])
    y = cbr(y, params["w2"], params["b2"], params["g2"], params["bt2"])
    return jnp.transpose(y, (0, 3, 1, 2))


# ----------------------------------------------------------------------------
if __name__ == "__main__":
    in_c, out_c = 8, 4
    N, Hin, Win = 2, 16, 16        # decoder input spatial
    Hs, Ws = 32, 32                # skip spatial (2x input -> identity resize)

    key = jax.random.PRNGKey(0)
    ks = jax.random.split(key, 10)

    params = {
        # ConvTranspose2d: (in_c, out_c, 2, 2)
        "up_w": 0.2 * jax.random.normal(ks[0], (in_c, out_c, 2, 2), jnp.float32),
        "up_b": 0.1 * jax.random.normal(ks[1], (out_c,), jnp.float32),
        # ConvBlock conv1: (out_c, 2*out_c, 3, 3)
        "w1": 0.2 * jax.random.normal(ks[2], (out_c, 2 * out_c, 3, 3), jnp.float32),
        "b1": 0.1 * jax.random.normal(ks[3], (out_c,), jnp.float32),
        "g1": 1.0 + 0.1 * jax.random.normal(ks[4], (out_c,), jnp.float32),
        "bt1": 0.1 * jax.random.normal(ks[5], (out_c,), jnp.float32),
        # ConvBlock conv2: (out_c, out_c, 3, 3)
        "w2": 0.2 * jax.random.normal(ks[6], (out_c, out_c, 3, 3), jnp.float32),
        "b2": 0.1 * jax.random.normal(ks[7], (out_c,), jnp.float32),
        "g2": 1.0 + 0.1 * jax.random.normal(ks[8], (out_c,), jnp.float32),
        "bt2": 0.1 * jax.random.normal(ks[9], (out_c,), jnp.float32),
    }

    kx, ksk = jax.random.split(jax.random.PRNGKey(42))
    inputs = jax.random.normal(kx, (N, in_c, Hin, Win), jnp.float32)   # NCHW
    skip = jax.random.normal(ksk, (N, out_c, Hs, Ws), jnp.float32)     # NCHW

    fwd = jax.jit(decoder_block_forward)
    out = jax.block_until_ready(fwd(params, inputs, skip))
    assert out.shape == (N, out_c, Hs, Ws), out.shape

    ref = _reference(params, inputs, skip)
    np.testing.assert_allclose(np.asarray(out), np.asarray(ref),
                               rtol=1e-3, atol=1e-3)
    print("KERNEL_OK")
</pallas_src>

<mosaic_0001>
module attributes {stable_mosaic.version = 11 : i64} {
  func.func @_up_kernel(%arg0: i32, %arg1: memref<1x16x128xf32, #tpu.memory_space<vmem>>, %arg2: memref<128x256xf32, #tpu.memory_space<vmem>>, %arg3: memref<1x256xf32, #tpu.memory_space<vmem>>, %arg4: memref<1x16x256xf32, #tpu.memory_space<vmem>>) attributes {dimension_semantics = [#tpu.dimension_semantics<parallel>], iteration_bounds = array<i64: 2>, scalar_prefetch = 0 : i64, scratch_operands = 0 : i64, tpu.core_type = #tpu.core_type<tc>, window_params = [{transform_indices = @transform_0, window_bounds = array<i64: 1, 16, 128>}, {pipeline_mode = #tpu.pipeline_mode<synchronous>, transform_indices = @transform_1, window_bounds = array<i64: 128, 256>}, {pipeline_mode = #tpu.pipeline_mode<synchronous>, transform_indices = @transform_2, window_bounds = array<i64: 1, 256>}, {transform_indices = @transform_3, window_bounds = array<i64: 1, 16, 256>}]} {
    %c0 = arith.constant 0 : index
    %c0_0 = arith.constant 0 : index
    %c0_1 = arith.constant 0 : index
    %0 = vector.load %arg1[%c0, %c0_0, %c0_1] : memref<1x16x128xf32, #tpu.memory_space<vmem>>, vector<1x16x128xf32>
    %1 = vector.shape_cast %0 : vector<1x16x128xf32> to vector<16x128xf32>
    %c0_2 = arith.constant 0 : index
    %c0_3 = arith.constant 0 : index
    %2 = vector.load %arg2[%c0_2, %c0_3] : memref<128x256xf32, #tpu.memory_space<vmem>>, vector<128x256xf32>
    %cst = arith.constant dense<0.000000e+00> : vector<16x256xf32>
    %3 = tpu.matmul %1, %2, %cst {dimension_numbers = #tpu.dot_dimension_numbers<[1], [0], [0], [1], [0, 0, 1, 1], [], []>} : vector<16x128xf32>, vector<128x256xf32>, vector<16x256xf32> -> vector<16x256xf32>
    %c0_4 = arith.constant 0 : index
    %c0_5 = arith.constant 0 : index
    %4 = vector.load %arg3[%c0_4, %c0_5] : memref<1x256xf32, #tpu.memory_space<vmem>>, vector<1x256xf32>
    %5 = vector.broadcast %4 : vector<1x256xf32> to vector<16x256xf32>
    %6 = arith.addf %3, %5 : vector<16x256xf32>
    %c0_6 = arith.constant 0 : index
    %c0_7 = arith.constant 0 : index
    %c0_8 = arith.constant 0 : index
    %7 = vector.load %arg4[%c0_6, %c0_7, %c0_8] : memref<1x16x256xf32, #tpu.memory_space<vmem>>, vector<1x16x256xf32>
    %8 = vector.shape_cast %7 : vector<1x16x256xf32> to vector<16x256xf32>
    %9 = vector.shape_cast %6 : vector<16x256xf32> to vector<1x16x256xf32>
    tpu.vector_store %arg4[%c0_6, %c0_7, %c0_8], %9 {strides = array<i32>} : memref<1x16x256xf32, #tpu.memory_space<vmem>>, vector<1x16x256xf32>,
    return
  }
  func.func @transform_0(%arg0: i32) -> (i32, i32, i32) {
    %c0_i32 = arith.constant 0 : i32
    %c0_i32_0 = arith.constant 0 : i32
    %c0_i32_1 = arith.constant 0 : i32
    return %arg0, %c0_i32, %c0_i32_0 : i32, i32, i32
  }
  func.func @transform_1(%arg0: i32) -> (i32, i32) {
    %c0_i32 = arith.constant 0 : i32
    %c0_i32_0 = arith.constant 0 : i32
    %c0_i32_1 = arith.constant 0 : i32
    return %c0_i32, %c0_i32_0 : i32, i32
  }
  func.func @transform_2(%arg0: i32) -> (i32, i32) {
    %c0_i32 = arith.constant 0 : i32
    %c0_i32_0 = arith.constant 0 : i32
    %c0_i32_1 = arith.constant 0 : i32
    return %c0_i32, %c0_i32_0 : i32, i32
  }
  func.func @transform_3(%arg0: i32) -> (i32, i32, i32) {
    %c0_i32 = arith.constant 0 : i32
    %c0_i32_0 = arith.constant 0 : i32
    %c0_i32_1 = arith.constant 0 : i32
    return %arg0, %c0_i32, %c0_i32_0 : i32, i32, i32
  }
}

module attributes {stable_mosaic.version = 11 : i64} {
  func.func @_conv_cat_kernel(%arg0: i32, %arg1: memref<1x32x128xf32, #tpu.memory_space<vmem>>, %arg2: memref<1x32x128xf32, #tpu.memory_space<vmem>>, %arg3: memref<3x128x128xf32, #tpu.memory_space<vmem>>, %arg4: memref<3x128x128xf32, #tpu.memory_space<vmem>>, %arg5: memref<128x4xf32, #tpu.memory_space<vmem>>, %arg6: memref<4x128xf32, #tpu.memory_space<vmem>>, %arg7: memref<1x32x128xf32, #tpu.memory_space<vmem>>, %arg8: memref<1x1x4xf32, #tpu.memory_space<vmem>>, %arg9: memref<1x1x4xf32, #tpu.memory_space<vmem>>) attributes {dimension_semantics = [#tpu.dimension_semantics<parallel>], iteration_bounds = array<i64: 2>, scalar_prefetch = 0 : i64, scratch_operands = 0 : i64, tpu.core_type = #tpu.core_type<tc>, window_params = [{transform_indices = @transform_0, window_bounds = array<i64: 1, 32, 128>}, {transform_indices = @transform_1, window_bounds = array<i64: 1, 32, 128>}, {pipeline_mode = #tpu.pipeline_mode<synchronous>, transform_indices = @transform_2, window_bounds = array<i64: 3, 128, 128>}, {pipeline_mode = #tpu.pipeline_mode<synchronous>, transform_indices = @transform_3, window_bounds = array<i64: 3, 128, 128>}, {pipeline_mode = #tpu.pipeline_mode<synchronous>, transform_indices = @transform_4, window_bounds = array<i64: 128, 4>}, {pipeline_mode = #tpu.pipeline_mode<synchronous>, transform_indices = @transform_5, window_bounds = array<i64: 4, 128>}, {transform_indices = @transform_6, window_bounds = array<i64: 1, 32, 128>}, {transform_indices = @transform_7, window_bounds = array<i64: 1, 1, 4>}, {transform_indices = @transform_8, window_bounds = array<i64: 1, 1, 4>}]} {
    %c0 = arith.constant 0 : index
    %c0_0 = arith.constant 0 : index
    %c0_1 = arith.constant 0 : index
    %0 = vector.load %arg1[%c0, %c0_0, %c0_1] : memref<1x32x128xf32, #tpu.memory_space<vmem>>, vector<1x32x128xf32>
    %1 = vector.shape_cast %0 : vector<1x32x128xf32> to vector<32x128xf32>
    %cst = arith.constant 0.000000e+00 : f32
    %2 = vector.broadcast %cst : f32 to vector<1x128xf32>
    %3 = tpu.concatenate %2, %1, %2 in 0 : vector<1x128xf32>, vector<32x128xf32>, vector<1x128xf32> -> vector<34x128xf32>
    %4 = vector.extract_strided_slice %3 {offsets = [0, 0], sizes = [32, 128], strides = [1, 1]} : vector<34x128xf32> to vector<32x128xf32>
    %c0_2 = arith.constant 0 : index
    %c0_3 = arith.constant 0 : index
    %c0_4 = arith.constant 0 : index
    %5 = vector.load %arg3[%c0_2, %c0_3, %c0_4] : memref<3x128x128xf32, #tpu.memory_space<vmem>>, vector<1x128x128xf32>
    %6 = vector.shape_cast %5 : vector<1x128x128xf32> to vector<128x128xf32>
    %cst_5 = arith.constant dense<0.000000e+00> : vector<32x128xf32>
    %7 = tpu.matmul %4, %6, %cst_5 {dimension_numbers = #tpu.dot_dimension_numbers<[1], [0], [0], [1], [0, 0, 1, 1], [], []>} : vector<32x128xf32>, vector<128x128xf32>, vector<32x128xf32> -> vector<32x128xf32>
    %8 = vector.extract_strided_slice %3 {offsets = [1, 0], sizes = [32, 128], strides = [1, 1]} : vector<34x128xf32> to vector<32x128xf32>
    %c1 = arith.constant 1 : index
    %c0_6 = arith.constant 0 : index
    %c0_7 = arith.constant 0 : index
    %9 = vector.load %arg3[%c1, %c0_6, %c0_7] : memref<3x128x128xf32, #tpu.memory_space<vmem>>, vector<1x128x128xf32>
    %10 = vector.shape_cast %9 : vector<1x128x128xf32> to vector<128x128xf32>
    %cst_8 = arith.constant dense<0.000000e+00> : vector<32x128xf32>
    %11 = tpu.matmul %8, %10, %cst_8 {dimension_numbers = #tpu.dot_dimension_numbers<[1], [0], [0], [1], [0, 0, 1, 1], [], []>} : vector<32x128xf32>, vector<128x128xf32>, vector<32x128xf32> -> vector<32x128xf32>
    %12 = arith.addf %7, %11 : vector<32x128xf32>
    %13 = vector.extract_strided_slice %3 {offsets = [2, 0], sizes = [32, 128], strides = [1, 1]} : vector<34x128xf32> to vector<32x128xf32>
    %c2 = arith.constant 2 : index
    %c0_9 = arith.constant 0 : index
    %c0_10 = arith.constant 0 : index
    %14 = vector.load %arg3[%c2, %c0_9, %c0_10] : memref<3x128x128xf32, #tpu.memory_space<vmem>>, vector<1x128x128xf32>
    %15 = vector.shape_cast %14 : vector<1x128x128xf32> to vector<128x128xf32>
    %cst_11 = arith.constant dense<0.000000e+00> : vector<32x128xf32>
    %16 = tpu.matmul %13, %15, %cst_11 {dimension_numbers = #tpu.dot_dimension_numbers<[1], [0], [0], [1], [0, 0, 1, 1], [], []>} : vector<32x128xf32>, vector<128x128xf32>, vector<32x128xf32> -> vector<32x128xf32>
    %17 = arith.addf %12, %16 : vector<32x128xf32>
    %c0_12 = arith.constant 0 : index
    %c0_13 = arith.constant 0 : index
    %c0_14 = arith.constant 0 : index
    %18 = vector.load %arg2[%c0_12, %c0_13, %c0_14] : memref<1x32x128xf32, #tpu.memory_space<vmem>>, vector<1x32x128xf32>
    %19 = vector.shape_cast %18 : vector<1x32x128xf32> to vector<32x128xf32>
    %cst_15 = arith.constant 0.000000e+00 : f32
    %20 = vector.broadcast %cst_15 : f32 to vector<1x128xf32>
    %21 = tpu.concatenate %20, %19, %20 in 0 : vector<1x128xf32>, vector<32x128xf32>, vector<1x128xf32> -> vector<34x128xf32>
    %22 = vector.extract_strided_slice %21 {offsets = [0, 0], sizes = [32, 128], strides = [1, 1]} : vector<34x128xf32> to vector<32x128xf32>
    %c0_16 = arith.constant 0 : index
    %c0_17 = arith.constant 0 : index
    %c0_18 = arith.constant 0 : index
    %23 = vector.load %arg4[%c0_16, %c0_17, %c0_18] : memref<3x128x128xf32, #tpu.memory_space<vmem>>, vector<1x128x128xf32>
    %24 = vector.shape_cast %23 : vector<1x128x128xf32> to vector<128x128xf32>
    %cst_19 = arith.constant dense<0.000000e+00> : vector<32x128xf32>
    %25 = tpu.matmul %22, %24, %cst_19 {dimension_numbers = #tpu.dot_dimension_numbers<[1], [0], [0], [1], [0, 0, 1, 1], [], []>} : vector<32x128xf32>, vector<128x128xf32>, vector<32x128xf32> -> vector<32x128xf32>
    %26 = vector.extract_strided_slice %21 {offsets = [1, 0], sizes = [32, 128], strides = [1, 1]} : vector<34x128xf32> to vector<32x128xf32>
    %c1_20 = arith.constant 1 : index
    %c0_21 = arith.constant 0 : index
    %c0_22 = arith.constant 0 : index
    %27 = vector.load %arg4[%c1_20, %c0_21, %c0_22] : memref<3x128x128xf32, #tpu.memory_space<vmem>>, vector<1x128x128xf32>
    %28 = vector.shape_cast %27 : vector<1x128x128xf32> to vector<128x128xf32>
    %cst_23 = arith.constant dense<0.000000e+00> : vector<32x128xf32>
    %29 = tpu.matmul %26, %28, %cst_23 {dimension_numbers = #tpu.dot_dimension_numbers<[1], [0], [0], [1], [0, 0, 1, 1], [], []>} : vector<32x128xf32>, vector<128x128xf32>, vector<32x128xf32> -> vector<32x128xf32>
    %30 = arith.addf %25, %29 : vector<32x128xf32>
    %31 = vector.extract_strided_slice %21 {offsets = [2, 0], sizes = [32, 128], strides = [1, 1]} : vector<34x128xf32> to vector<32x128xf32>
    %c2_24 = arith.constant 2 : index
    %c0_25 = arith.constant 0 : index
    %c0_26 = arith.constant 0 : index
    %32 = vector.load %arg4[%c2_24, %c0_25, %c0_26] : memref<3x128x128xf32, #tpu.memory_space<vmem>>, vector<1x128x128xf32>
    %33 = vector.shape_cast %32 : vector<1x128x128xf32> to vector<128x128xf32>
    %cst_27 = arith.constant dense<0.000000e+00> : vector<32x128xf32>
    %34 = tpu.matmul %31, %33, %cst_27 {dimension_numbers = #tpu.dot_dimension_numbers<[1], [0], [0], [1], [0, 0, 1, 1], [], []>} : vector<32x128xf32>, vector<128x128xf32>, vector<32x128xf32> -> vector<32x128xf32>
    %35 = arith.addf %30, %34 : vector<32x128xf32>
    %36 = arith.addf %17, %35 : vector<32x128xf32>
    %c0_28 = arith.constant 0 : index
    %c0_29 = arith.constant 0 : index
    %c0_30 = arith.constant 0 : index
    %37 = vector.load %arg7[%c0_28, %c0_29, %c0_30] : memref<1x32x128xf32, #tpu.memory_space<vmem>>, vector<1x32x128xf32>
    %38 = vector.shape_cast %37 : vector<1x32x128xf32> to vector<32x128xf32>
    %39 = vector.shape_cast %36 : vector<32x128xf32> to vector<1x32x128xf32>
    tpu.vector_store %arg7[%c0_28, %c0_29, %c0_30], %39 {strides = array<i32>} : memref<1x32x128xf32, #tpu.memory_space<vmem>>, vector<1x32x128xf32>,
    %c0_31 = arith.constant 0 : index
    %c0_32 = arith.constant 0 : index
    %40 = vector.load %arg5[%c0_31, %c0_32] : memref<128x4xf32, #tpu.memory_space<vmem>>, vector<128x4xf32>
    %c0_33 = arith.constant 0 : index
    %c0_34 = arith.constant 0 : index
    %41 = vector.load %arg6[%c0_33, %c0_34] : memref<4x128xf32, #tpu.memory_space<vmem>>, vector<4x128xf32>
    %cst_35 = arith.constant dense<0.000000e+00> : vector<128xf32>
    %42 = vector.multi_reduction <add>, %36, %cst_35 [0] : vector<32x128xf32> to vector<128xf32>
    %43 = vector.shape_cast %42 : vector<128xf32> to vector<1x128xf32>
    %cst_36 = arith.constant dense<0.000000e+00> : vector<1x4xf32>
    %44 = tpu.matmul %43, %40, %cst_36 {dimension_numbers = #tpu.dot_dimension_numbers<[1], [0], [0], [1], [0, 0, 1, 1], [], []>} : vector<1x128xf32>, vector<128x4xf32>, vector<1x4xf32> -> vector<1x4xf32>
    %cst_37 = arith.constant 9.765625E-4 : f32
    %45 = vector.broadcast %cst_37 : f32 to vector<1x4xf32>
    %46 = arith.mulf %44, %45 : vector<1x4xf32>
    %cst_38 = arith.constant dense<0.000000e+00> : vector<1x128xf32>
    %47 = tpu.matmul %46, %41, %cst_38 {dimension_numbers = #tpu.dot_dimension_numbers<[1], [0], [0], [1], [0, 0, 1, 1], [], []>} : vector<1x4xf32>, vector<4x128xf32>, vector<1x128xf32> -> vector<1x128xf32>
    %48 = vector.broadcast %47 : vector<1x128xf32> to vector<32x128xf32>
    %49 = arith.subf %36, %48 : vector<32x128xf32>
    %50 = arith.mulf %49, %49 : vector<32x128xf32>
    %cst_39 = arith.constant dense<0.000000e+00> : vector<128xf32>
    %51 = vector.multi_reduction <add>, %50, %cst_39 [0] : vector<32x128xf32> to vector<128xf32>
    %52 = vector.shape_cast %51 : vector<128xf32> to vector<1x128xf32>
    %cst_40 = arith.constant dense<0.000000e+00> : vector<1x4xf32>
    %53 = tpu.matmul %52, %40, %cst_40 {dimension_numbers = #tpu.dot_dimension_numbers<[1], [0], [0], [1], [0, 0, 1, 1], [], []>} : vector<1x128xf32>, vector<128x4xf32>, vector<1x4xf32> -> vector<1x4xf32>
    %c0_41 = arith.constant 0 : index
    %c0_42 = arith.constant 0 : index
    %c0_43 = arith.constant 0 : index
    %54 = vector.load %arg8[%c0_41, %c0_42, %c0_43] : memref<1x1x4xf32, #tpu.memory_space<vmem>>, vector<1x1x4xf32>
    %55 = vector.shape_cast %54 : vector<1x1x4xf32> to vector<1x4xf32>
    %56 = vector.shape_cast %44 : vector<1x4xf32> to vector<1x1x4xf32>
    tpu.vector_store %arg8[%c0_41, %c0_42, %c0_43], %56 {strides = array<i32>} : memref<1x1x4xf32, #tpu.memory_space<vmem>>, vector<1x1x4xf32>,
    %c0_44 = arith.constant 0 : index
    %c0_45 = arith.constant 0 : index
    %c0_46 = arith.constant 0 : index
    %57 = vector.load %arg9[%c0_44, %c0_45, %c0_46] : memref<1x1x4xf32, #tpu.memory_space<vmem>>, vector<1x1x4xf32>
    %58 = vector.shape_cast %57 : vector<1x1x4xf32> to vector<1x4xf32>
    %59 = vector.shape_cast %53 : vector<1x4xf32> to vector<1x1x4xf32>
    tpu.vector_store %arg9[%c0_44, %c0_45, %c0_46], %59 {strides = array<i32>} : memref<1x1x4xf32, #tpu.memory_space<vmem>>, vector<1x1x4xf32>,
    return
  }
  func.func @transform_0(%arg0: i32) -> (i32, i32, i32) {
    %c0_i32 = arith.constant 0 : i32
    %c0_i32_0 = arith.constant 0 : i32
    %c0_i32_1 = arith.constant 0 : i32
    return %arg0, %c0_i32, %c0_i32_0 : i32, i32, i32
  }
  func.func @transform_1(%arg0: i32) -> (i32, i32, i32) {
    %c0_i32 = arith.constant 0 : i32
    %c0_i32_0 = arith.constant 0 : i32
    %c0_i32_1 = arith.constant 0 : i32
    return %arg0, %c0_i32, %c0_i32_0 : i32, i32, i32
  }
  func.func @transform_2(%arg0: i32) -> (i32, i32, i32) {
    %c0_i32 = arith.constant 0 : i32
    %c0_i32_0 = arith.constant 0 : i32
    %c0_i32_1 = arith.constant 0 : i32
    %c0_i32_2 = arith.constant 0 : i32
    return %c0_i32, %c0_i32_0, %c0_i32_1 : i32, i32, i32
  }
  func.func @transform_3(%arg0: i32) -> (i32, i32, i32) {
    %c0_i32 = arith.constant 0 : i32
    %c0_i32_0 = arith.constant 0 : i32
    %c0_i32_1 = arith.constant 0 : i32
    %c0_i32_2 = arith.constant 0 : i32
    return %c0_i32, %c0_i32_0, %c0_i32_1 : i32, i32, i32
  }
  func.func @transform_4(%arg0: i32) -> (i32, i32) {
    %c0_i32 = arith.constant 0 : i32
    %c0_i32_0 = arith.constant 0 : i32
    %c0_i32_1 = arith.constant 0 : i32
    return %c0_i32, %c0_i32_0 : i32, i32
  }
  func.func @transform_5(%arg0: i32) -> (i32, i32) {
    %c0_i32 = arith.constant 0 : i32
    %c0_i32_0 = arith.constant 0 : i32
    %c0_i32_1 = arith.constant 0 : i32
    return %c0_i32, %c0_i32_0 : i32, i32
  }
  func.func @transform_6(%arg0: i32) -> (i32, i32, i32) {
    %c0_i32 = arith.constant 0 : i32
    %c0_i32_0 = arith.constant 0 : i32
    %c0_i32_1 = arith.constant 0 : i32
    return %arg0, %c0_i32, %c0_i32_0 : i32, i32, i32
  }
  func.func @transform_7(%arg0: i32) -> (i32, i32, i32) {
    %c0_i32 = arith.constant 0 : i32
    %c0_i32_0 = arith.constant 0 : i32
    %c0_i32_1 = arith.constant 0 : i32
    return %arg0, %c0_i32, %c0_i32_0 : i32, i32, i32
  }
  func.func @transform_8(%arg0: i32) -> (i32, i32, i32) {
    %c0_i32 = arith.constant 0 : i32
    %c0_i32_0 = arith.constant 0 : i32
    %c0_i32_1 = arith.constant 0 : i32
    return %arg0, %c0_i32, %c0_i32_0 : i32, i32, i32
  }
}

module attributes {stable_mosaic.version = 11 : i64} {
  func.func @_conv_act_kernel(%arg0: i32, %arg1: memref<1x32x128xf32, #tpu.memory_space<vmem>>, %arg2: memref<1x128xf32, #tpu.memory_space<vmem>>, %arg3: memref<1x128xf32, #tpu.memory_space<vmem>>, %arg4: memref<3x128x128xf32, #tpu.memory_space<vmem>>, %arg5: memref<128x4xf32, #tpu.memory_space<vmem>>, %arg6: memref<4x128xf32, #tpu.memory_space<vmem>>, %arg7: memref<1x32x128xf32, #tpu.memory_space<vmem>>, %arg8: memref<1x1x4xf32, #tpu.memory_space<vmem>>, %arg9: memref<1x1x4xf32, #tpu.memory_space<vmem>>) attributes {dimension_semantics = [#tpu.dimension_semantics<parallel>], iteration_bounds = array<i64: 2>, scalar_prefetch = 0 : i64, scratch_operands = 0 : i64, tpu.core_type = #tpu.core_type<tc>, window_params = [{transform_indices = @transform_0, window_bounds = array<i64: 1, 32, 128>}, {pipeline_mode = #tpu.pipeline_mode<synchronous>, transform_indices = @transform_1, window_bounds = array<i64: 1, 128>}, {pipeline_mode = #tpu.pipeline_mode<synchronous>, transform_indices = @transform_2, window_bounds = array<i64: 1, 128>}, {pipeline_mode = #tpu.pipeline_mode<synchronous>, transform_indices = @transform_3, window_bounds = array<i64: 3, 128, 128>}, {pipeline_mode = #tpu.pipeline_mode<synchronous>, transform_indices = @transform_4, window_bounds = array<i64: 128, 4>}, {pipeline_mode = #tpu.pipeline_mode<synchronous>, transform_indices = @transform_5, window_bounds = array<i64: 4, 128>}, {transform_indices = @transform_6, window_bounds = array<i64: 1, 32, 128>}, {transform_indices = @transform_7, window_bounds = array<i64: 1, 1, 4>}, {transform_indices = @transform_8, window_bounds = array<i64: 1, 1, 4>}]} {
    %c0 = arith.constant 0 : index
    %c0_0 = arith.constant 0 : index
    %c0_1 = arith.constant 0 : index
    %0 = vector.load %arg1[%c0, %c0_0, %c0_1] : memref<1x32x128xf32, #tpu.memory_space<vmem>>, vector<1x32x128xf32>
    %1 = vector.shape_cast %0 : vector<1x32x128xf32> to vector<32x128xf32>
    %c0_2 = arith.constant 0 : index
    %c0_3 = arith.constant 0 : index
    %2 = vector.load %arg2[%c0_2, %c0_3] : memref<1x128xf32, #tpu.memory_space<vmem>>, vector<1x128xf32>
    %3 = vector.broadcast %2 : vector<1x128xf32> to vector<32x128xf32>
    %4 = arith.mulf %1, %3 : vector<32x128xf32>
    %c0_4 = arith.constant 0 : index
    %c0_5 = arith.constant 0 : index
    %5 = vector.load %arg3[%c0_4, %c0_5] : memref<1x128xf32, #tpu.memory_space<vmem>>, vector<1x128xf32>
    %6 = vector.broadcast %5 : vector<1x128xf32> to vector<32x128xf32>
    %7 = arith.addf %4, %6 : vector<32x128xf32>
    %cst = arith.constant 0.000000e+00 : f32
    %8 = vector.broadcast %cst : f32 to vector<32x128xf32>
    %9 = arith.maximumf %7, %8 : vector<32x128xf32>
    %cst_6 = arith.constant 0.000000e+00 : f32
    %10 = vector.broadcast %cst_6 : f32 to vector<1x128xf32>
    %11 = tpu.concatenate %10, %9, %10 in 0 : vector<1x128xf32>, vector<32x128xf32>, vector<1x128xf32> -> vector<34x128xf32>
    %12 = vector.extract_strided_slice %11 {offsets = [0, 0], sizes = [32, 128], strides = [1, 1]} : vector<34x128xf32> to vector<32x128xf32>
    %c0_7 = arith.constant 0 : index
    %c0_8 = arith.constant 0 : index
    %c0_9 = arith.constant 0 : index
    %13 = vector.load %arg4[%c0_7, %c0_8, %c0_9] : memref<3x128x128xf32, #tpu.memory_space<vmem>>, vector<1x128x128xf32>
    %14 = vector.shape_cast %13 : vector<1x128x128xf32> to vector<128x128xf32>
    %cst_10 = arith.constant dense<0.000000e+00> : vector<32x128xf32>
    %15 = tpu.matmul %12, %14, %cst_10 {dimension_numbers = #tpu.dot_dimension_numbers<[1], [0], [0], [1], [0, 0, 1, 1], [], []>} : vector<32x128xf32>, vector<128x128xf32>, vector<32x128xf32> -> vector<32x128xf32>
    %16 = vector.extract_strided_slice %11 {offsets = [1, 0], sizes = [32, 128], strides = [1, 1]} : vector<34x128xf32> to vector<32x128xf32>
    %c1 = arith.constant 1 : index
    %c0_11 = arith.constant 0 : index
    %c0_12 = arith.constant 0 : index
    %17 = vector.load %arg4[%c1, %c0_11, %c0_12] : memref<3x128x128xf32, #tpu.memory_space<vmem>>, vector<1x128x128xf32>
    %18 = vector.shape_cast %17 : vector<1x128x128xf32> to vector<128x128xf32>
    %cst_13 = arith.constant dense<0.000000e+00> : vector<32x128xf32>
    %19 = tpu.matmul %16, %18, %cst_13 {dimension_numbers = #tpu.dot_dimension_numbers<[1], [0], [0], [1], [0, 0, 1, 1], [], []>} : vector<32x128xf32>, vector<128x128xf32>, vector<32x128xf32> -> vector<32x128xf32>
    %20 = arith.addf %15, %19 : vector<32x128xf32>
    %21 = vector.extract_strided_slice %11 {offsets = [2, 0], sizes = [32, 128], strides = [1, 1]} : vector<34x128xf32> to vector<32x128xf32>
    %c2 = arith.constant 2 : index
    %c0_14 = arith.constant 0 : index
    %c0_15 = arith.constant 0 : index
    %22 = vector.load %arg4[%c2, %c0_14, %c0_15] : memref<3x128x128xf32, #tpu.memory_space<vmem>>, vector<1x128x128xf32>
    %23 = vector.shape_cast %22 : vector<1x128x128xf32> to vector<128x128xf32>
    %cst_16 = arith.constant dense<0.000000e+00> : vector<32x128xf32>
    %24 = tpu.matmul %21, %23, %cst_16 {dimension_numbers = #tpu.dot_dimension_numbers<[1], [0], [0], [1], [0, 0, 1, 1], [], []>} : vector<32x128xf32>, vector<128x128xf32>, vector<32x128xf32> -> vector<32x128xf32>
    %25 = arith.addf %20, %24 : vector<32x128xf32>
    %c0_17 = arith.constant 0 : index
    %c0_18 = arith.constant 0 : index
    %c0_19 = arith.constant 0 : index
    %26 = vector.load %arg7[%c0_17, %c0_18, %c0_19] : memref<1x32x128xf32, #tpu.memory_space<vmem>>, vector<1x32x128xf32>
    %27 = vector.shape_cast %26 : vector<1x32x128xf32> to vector<32x128xf32>
    %28 = vector.shape_cast %25 : vector<32x128xf32> to vector<1x32x128xf32>
    tpu.vector_store %arg7[%c0_17, %c0_18, %c0_19], %28 {strides = array<i32>} : memref<1x32x128xf32, #tpu.memory_space<vmem>>, vector<1x32x128xf32>,
    %c0_20 = arith.constant 0 : index
    %c0_21 = arith.constant 0 : index
    %29 = vector.load %arg5[%c0_20, %c0_21] : memref<128x4xf32, #tpu.memory_space<vmem>>, vector<128x4xf32>
    %c0_22 = arith.constant 0 : index
    %c0_23 = arith.constant 0 : index
    %30 = vector.load %arg6[%c0_22, %c0_23] : memref<4x128xf32, #tpu.memory_space<vmem>>, vector<4x128xf32>
    %cst_24 = arith.constant dense<0.000000e+00> : vector<128xf32>
    %31 = vector.multi_reduction <add>, %25, %cst_24 [0] : vector<32x128xf32> to vector<128xf32>
    %32 = vector.shape_cast %31 : vector<128xf32> to vector<1x128xf32>
    %cst_25 = arith.constant dense<0.000000e+00> : vector<1x4xf32>
    %33 = tpu.matmul %32, %29, %cst_25 {dimension_numbers = #tpu.dot_dimension_numbers<[1], [0], [0], [1], [0, 0, 1, 1], [], []>} : vector<1x128xf32>, vector<128x4xf32>, vector<1x4xf32> -> vector<1x4xf32>
    %cst_26 = arith.constant 9.765625E-4 : f32
    %34 = vector.broadcast %cst_26 : f32 to vector<1x4xf32>
    %35 = arith.mulf %33, %34 : vector<1x4xf32>
    %cst_27 = arith.constant dense<0.000000e+00> : vector<1x128xf32>
    %36 = tpu.matmul %35, %30, %cst_27 {dimension_numbers = #tpu.dot_dimension_numbers<[1], [0], [0], [1], [0, 0, 1, 1], [], []>} : vector<1x4xf32>, vector<4x128xf32>, vector<1x128xf32> -> vector<1x128xf32>
    %37 = vector.broadcast %36 : vector<1x128xf32> to vector<32x128xf32>
    %38 = arith.subf %25, %37 : vector<32x128xf32>
    %39 = arith.mulf %38, %38 : vector<32x128xf32>
    %cst_28 = arith.constant dense<0.000000e+00> : vector<128xf32>
    %40 = vector.multi_reduction <add>, %39, %cst_28 [0] : vector<32x128xf32> to vector<128xf32>
    %41 = vector.shape_cast %40 : vector<128xf32> to vector<1x128xf32>
    %cst_29 = arith.constant dense<0.000000e+00> : vector<1x4xf32>
    %42 = tpu.matmul %41, %29, %cst_29 {dimension_numbers = #tpu.dot_dimension_numbers<[1], [0], [0], [1], [0, 0, 1, 1], [], []>} : vector<1x128xf32>, vector<128x4xf32>, vector<1x4xf32> -> vector<1x4xf32>
    %c0_30 = arith.constant 0 : index
    %c0_31 = arith.constant 0 : index
    %c0_32 = arith.constant 0 : index
    %43 = vector.load %arg8[%c0_30, %c0_31, %c0_32] : memref<1x1x4xf32, #tpu.memory_space<vmem>>, vector<1x1x4xf32>
    %44 = vector.shape_cast %43 : vector<1x1x4xf32> to vector<1x4xf32>
    %45 = vector.shape_cast %33 : vector<1x4xf32> to vector<1x1x4xf32>
    tpu.vector_store %arg8[%c0_30, %c0_31, %c0_32], %45 {strides = array<i32>} : memref<1x1x4xf32, #tpu.memory_space<vmem>>, vector<1x1x4xf32>,
    %c0_33 = arith.constant 0 : index
    %c0_34 = arith.constant 0 : index
    %c0_35 = arith.constant 0 : index
    %46 = vector.load %arg9[%c0_33, %c0_34, %c0_35] : memref<1x1x4xf32, #tpu.memory_space<vmem>>, vector<1x1x4xf32>
    %47 = vector.shape_cast %46 : vector<1x1x4xf32> to vector<1x4xf32>
    %48 = vector.shape_cast %42 : vector<1x4xf32> to vector<1x1x4xf32>
    tpu.vector_store %arg9[%c0_33, %c0_34, %c0_35], %48 {strides = array<i32>} : memref<1x1x4xf32, #tpu.memory_space<vmem>>, vector<1x1x4xf32>,
    return
  }
  func.func @transform_0(%arg0: i32) -> (i32, i32, i32) {
    %c0_i32 = arith.constant 0 : i32
    %c0_i32_0 = arith.constant 0 : i32
    %c0_i32_1 = arith.constant 0 : i32
    return %arg0, %c0_i32, %c0_i32_0 : i32, i32, i32
  }
  func.func @transform_1(%arg0: i32) -> (i32, i32) {
    %c0_i32 = arith.constant 0 : i32
    %c0_i32_0 = arith.constant 0 : i32
    %c0_i32_1 = arith.constant 0 : i32
    return %c0_i32, %c0_i32_0 : i32, i32
  }
  func.func @transform_2(%arg0: i32) -> (i32, i32) {
    %c0_i32 = arith.constant 0 : i32
    %c0_i32_0 = arith.constant 0 : i32
    %c0_i32_1 = arith.constant 0 : i32
    return %c0_i32, %c0_i32_0 : i32, i32
  }
  func.func @transform_3(%arg0: i32) -> (i32, i32, i32) {
    %c0_i32 = arith.constant 0 : i32
    %c0_i32_0 = arith.constant 0 : i32
    %c0_i32_1 = arith.constant 0 : i32
    %c0_i32_2 = arith.constant 0 : i32
    return %c0_i32, %c0_i32_0, %c0_i32_1 : i32, i32, i32
  }
  func.func @transform_4(%arg0: i32) -> (i32, i32) {
    %c0_i32 = arith.constant 0 : i32
    %c0_i32_0 = arith.constant 0 : i32
    %c0_i32_1 = arith.constant 0 : i32
    return %c0_i32, %c0_i32_0 : i32, i32
  }
  func.func @transform_5(%arg0: i32) -> (i32, i32) {
    %c0_i32 = arith.constant 0 : i32
    %c0_i32_0 = arith.constant 0 : i32
    %c0_i32_1 = arith.constant 0 : i32
    return %c0_i32, %c0_i32_0 : i32, i32
  }
  func.func @transform_6(%arg0: i32) -> (i32, i32, i32) {
    %c0_i32 = arith.constant 0 : i32
    %c0_i32_0 = arith.constant 0 : i32
    %c0_i32_1 = arith.constant 0 : i32
    return %arg0, %c0_i32, %c0_i32_0 : i32, i32, i32
  }
  func.func @transform_7(%arg0: i32) -> (i32, i32, i32) {
    %c0_i32 = arith.constant 0 : i32
    %c0_i32_0 = arith.constant 0 : i32
    %c0_i32_1 = arith.constant 0 : i32
    return %arg0, %c0_i32, %c0_i32_0 : i32, i32, i32
  }
  func.func @transform_8(%arg0: i32) -> (i32, i32, i32) {
    %c0_i32 = arith.constant 0 : i32
    %c0_i32_0 = arith.constant 0 : i32
    %c0_i32_1 = arith.constant 0 : i32
    return %arg0, %c0_i32, %c0_i32_0 : i32, i32, i32
  }
}

</mosaic_0001>

<bundles_post_ra>
// kernel: tile.18
= control target key start
LH: loop header
LB: loop body
LE: loop exit
PB: predicated region body
PF: predicated region fallthrough
CT: control target
= control target key end

     0   :  { %s64_s0 = inlined_call_operand.vmem [shape: f32[4], index: 0, kind: input, shape index: {}]   ;;  %s65_s1 = inlined_call_operand.vmem [shape: f32[64,4], index: 1, kind: output, shape index: {}]  }
   0x1   :  { %v4_v0 = vld [vmem:[%s64_s0] ss:$0 sm:$0xff] }
   0x2   :  { %5 = vst [vmem:[%s65_s1] sm:$0xff] %v4_v0  ;;  %20 = vst [vmem:[%s65_s1 + $0x8] sm:$0xff] %v4_v0 }
   0x3   :  { %21 = vst [vmem:[%s65_s1 + $0x10] sm:$0xff] %v4_v0  ;;  %22 = vst [vmem:[%s65_s1 + $0x18] sm:$0xff] %v4_v0 }
   0x4   :  { %23 = vst [vmem:[%s65_s1 + $0x20] sm:$0xff] %v4_v0  ;;  %24 = vst [vmem:[%s65_s1 + $0x28] sm:$0xff] %v4_v0 }
   0x5   :  { %25 = vst [vmem:[%s65_s1 + $0x30] sm:$0xff] %v4_v0  ;;  %26 = vst [vmem:[%s65_s1 + $0x38] sm:$0xff] %v4_v0 }

// kernel: tile.19
= control target key start
LH: loop header
LB: loop body
LE: loop exit
PB: predicated region body
PF: predicated region fallthrough
CT: control target
= control target key end

     0   :  { %vm5_vm0 = vcmask 1041409   ;;  %s425_s14 = smov 124   ;;  %s426_s21 = smov 116   ;;  %vm7_vm1 = vcmask 31744   ;;  %vm17_vm2 = vcmask 1048544   ;;  %vm27_vm3 = vcmask 1015744   ;;  %s696_s0 = inlined_call_operand.vmem [shape: f32[64,4], index: 0, kind: input, shape index: {}]   ;;  %s697_s1 = inlined_call_operand.vmem [shape: f32[1,256], index: 1, kind: output, shape index: {}]  }
   0x1   :  { %v331_v0 = vld [vmem:[%s696_s0 + $0x1f] sm:$0x1]   ;;  %v335_v3 = vld [vmem:[%s696_s0 + $0x1d] sm:$0x1]   ;;  %v333_v6 = vld [vmem:[%s696_s0 + $0x1e] sm:$0x1]  }
   0x2   :  { %v332_v1 = vld [vmem:[%s696_s0 + $0x3e] sm:$0x2]   ;;  %v336_v4 = vld [vmem:[%s696_s0 + $0x3c] sm:$0x2]   ;;  %v334_v7 = vld [vmem:[%s696_s0 + $0x3d] sm:$0x2]  }
   0x3   :  { %v14_v2 = vsel %vm5_vm0, %v332_v1, %v331_v0  ;;  %v34_v5 = vsel %vm5_vm0, %v336_v4, %v335_v3  ;;  %v337_v8 = vld [vmem:[%s696_s0 + $0x1c] sm:$0x1]   ;;  %v24_v9 = vsel %vm5_vm0, %v334_v7, %v333_v6  ;;  %v339_v12 = vld [vmem:[%s696_s0 + $0x1b] sm:$0x1]   ;;  %v341_v14 = vld [vmem:[%s696_s0 + $0x1a] sm:$0x1]  }
   0x4   :  { %15 = vrot.lane.b32.xlu0 %v14_v2, %s425_s14  ;;  %35 = vrot.lane.b32.xlu1 %v34_v5, %s426_s21  ;;  %v338_v10 = vld [vmem:[%s696_s0 + $0x3b] sm:$0x2]   ;;  %v340_v13 = vld [vmem:[%s696_s0 + $0x3a] sm:$0x2]   ;;  %s427_s3 = smov 120   ;;  %s428_s4 = smov 112  }
   0x5   :  { %v44_v11 = vsel %vm5_vm0, %v338_v10, %v337_v8  ;;  %v342_v15 = vld [vmem:[%s696_s0 + $0x39] sm:$0x2]   ;;  %v54_v16 = vsel %vm5_vm0, %v340_v13, %v339_v12  ;;  %v343_v18 = vld [vmem:[%s696_s0 + $0x19] sm:$0x1]   ;;  %v345_v20 = vld [vmem:[%s696_s0 + $0x18] sm:$0x1]  }
   0x6   :  { %v64_v17 = vsel %vm5_vm0, %v342_v15, %v341_v14  ;;  %v344_v19 = vld [vmem:[%s696_s0 + $0x38] sm:$0x2]   ;;  %v346_v21 = vld [vmem:[%s696_s0 + $0x37] sm:$0x2]   ;;  %s429_s13 = smov 108   ;;  %s430_s14 = smov 104  }
   0x7   :  { %v74_v22 = vsel %vm5_vm0, %v344_v19, %v343_v18  ;;  %v84_v23 = vsel %vm5_vm0, %v346_v21, %v345_v20  ;;  %v347_v24 = vld [vmem:[%s696_s0 + $0x17] sm:$0x1]   ;;  %v349_v26 = vld [vmem:[%s696_s0 + $0x16] sm:$0x1]   ;;  %s431_s23 = smov 100   ;;  %s432_s24 = smov 96  }
   0x8   :  { %25 = vrot.lane.b32.xlu0 %v24_v9, %s427_s3  ;;  %45 = vrot.lane.b32.xlu1 %v44_v11, %s428_s4  ;;  %v348_v25 = vld [vmem:[%s696_s0 + $0x36] sm:$0x2]   ;;  %v350_v27 = vld [vmem:[%s696_s0 + $0x35] sm:$0x2]   ;;  %s433_s4 = smov 92   ;;  %s434_s5 = smov 88  }
   0x9   :  { %v94_v28 = vsel %vm5_vm0, %v348_v25, %v347_v24  ;;  %v104_v29 = vsel %vm5_vm0, %v350_v27, %v349_v26  ;;  %v351_v30 = vld [vmem:[%s696_s0 + $0x15] sm:$0x1]   ;;  %v353_v32 = vld [vmem:[%s696_s0 + $0x14] sm:$0x1]   ;;  %v355_v36 = vld [vmem:[%s696_s0 + $0x13] sm:$0x1]  }
   0xa   :  { %v352_v31 = vld [vmem:[%s696_s0 + $0x34] sm:$0x2]   ;;  %v354_v33 = vld [vmem:[%s696_s0 + $0x33] sm:$0x2]   ;;  %v356_v37 = vld [vmem:[%s696_s0 + $0x32] sm:$0x2]  }
   0xb   :  { %v114_v34 = vsel %vm5_vm0, %v352_v31, %v351_v30  ;;  %v124_v35 = vsel %vm5_vm0, %v354_v33, %v353_v32  ;;  %v357_v38 = vld [vmem:[%s696_s0 + $0x12] sm:$0x1]   ;;  %s436_s15 = smov 80   ;;  %v134_v40 = vsel %vm5_vm0, %v356_v37, %v355_v36  ;;  %v359_v42 = vld [vmem:[%s696_s0 + $0x11] sm:$0x1]   ;;  %s438_s29 = smov 72  }
   0xc   :  { %55 = vrot.lane.b32.xlu0 %v54_v16, %s429_s13  ;;  %65 = vrot.lane.b32.xlu1 %v64_v17, %s430_s14  ;;  %v358_v39 = vld [vmem:[%s696_s0 + $0x31] sm:$0x2]   ;;  %s435_s14 = smov 84   ;;  %v360_v43 = vld [vmem:[%s696_s0 + $0x30] sm:$0x2]   ;;  %s439_s9 = smov 68  }
   0xd   :  { %v144_v41 = vsel %vm5_vm0, %v358_v39, %v357_v38  ;;  %v361_v44 = vld [vmem:[%s696_s0 + $0x10] sm:$0x1]   ;;  %v2_v46 = vld [vmem:[%s696_s0] sm:$0x1]   ;;  %v154_v48 = vsel %vm5_vm0, %v360_v43, %v359_v42  ;;  %v363_v51 = vld [vmem:[%s696_s0 + $0xf] sm:$0x1]  }
   0xe   :  { %v362_v45 = vld [vmem:[%s696_s0 + $0x2f] sm:$0x2]   ;;  %v330_v47 = vld [vmem:[%s696_s0 + $0x1f] sm:$0x2]   ;;  %v364_v52 = vld [vmem:[%s696_s0 + $0x2e] sm:$0x2]  }
   0xf   :  { %v6_v49 = vsel %vm5_vm0, %v330_v47, %v2_v46  ;;  %v164_v50 = vsel %vm5_vm0, %v362_v45, %v361_v44  ;;  %v365_v53 = vld [vmem:[%s696_s0 + $0xe] sm:$0x1]   ;;  %s440_s10 = smov 64   ;;  %v174_v55 = vsel %vm5_vm0, %v364_v52, %v363_v51  ;;  %v367_v57 = vld [vmem:[%s696_s0 + $0xd] sm:$0x1]   ;;  %s441_s19 = smov 60  }
  0x10   :  { %75 = vrot.lane.b32.xlu0 %v74_v22, %s431_s23  ;;  %85 = vrot.lane.b32.xlu1 %v84_v23, %s432_s24  ;;  %s437_s24 = smov 76   ;;  %8 = vst.msk [vmem:[#allocation0] ss:$8 sm:$0x3] %vm7_vm1, %v6_v49   ;;  %v366_v54 = vld [vmem:[%s696_s0 + $0x2d] sm:$0x2]  }
  0x11   :  { %v184_v56 = vsel %vm5_vm0, %v366_v54, %v365_v53  ;;  %v368_v58 = vld [vmem:[%s696_s0 + $0x2c] sm:$0x2]   ;;  %v369_v59 = vld [vmem:[%s696_s0 + $0xc] sm:$0x1]   ;;  %s442_s20 = smov 56   ;;  %s444_s30 = smov 48  }
  0x12   :  { %v370_v60 = vld [vmem:[%s696_s0 + $0x2b] sm:$0x2]   ;;  %v194_v61 = vsel %vm5_vm0, %v368_v58, %v367_v57  ;;  %v371_v63 = vld [vmem:[%s696_s0 + $0xb] sm:$0x1]   ;;  %v373_v1 = vld [vmem:[%s696_s0 + $0xa] sm:$0x1]  }
  0x13   :  { %v204_v62 = vsel %vm5_vm0, %v370_v60, %v369_v59  ;;  %v372_v0 = vld [vmem:[%s696_s0 + $0x2a] sm:$0x2]   ;;  %v374_v2 = vld [vmem:[%s696_s0 + $0x29] sm:$0x2]   ;;  %v375_v5 = vld [vmem:[%s696_s0 + $0x9] sm:$0x1]  }
  0x14   :  { %95 = vrot.lane.b32.xlu0 %v94_v28, %s433_s4  ;;  %105 = vrot.lane.b32.xlu1 %v104_v29, %s434_s5  ;;  %v214_v3 = vsel %vm5_vm0, %v372_v0, %v371_v63  ;;  %v224_v4 = vsel %vm5_vm0, %v374_v2, %v373_v1  ;;  %v376_v6 = vld [vmem:[%s696_s0 + $0x28] sm:$0x2]   ;;  %v377_v7 = vld [vmem:[%s696_s0 + $0x8] sm:$0x1]   ;;  %s446_s11 = smov 40   ;;  %s448_s21 = smov 32  }
  0x15   :  { %v378_v8 = vld [vmem:[%s696_s0 + $0x27] sm:$0x2]   ;;  %v234_v9 = vsel %vm5_vm0, %v376_v6, %v375_v5  ;;  %v379_v11 = vld [vmem:[%s696_s0 + $0x7] sm:$0x1]   ;;  %v381_v13 = vld [vmem:[%s696_s0 + $0x6] sm:$0x1]  }
  0x16   :  { %v244_v10 = vsel %vm5_vm0, %v378_v8, %v377_v7  ;;  %v380_v12 = vld [vmem:[%s696_s0 + $0x26] sm:$0x2]   ;;  %v382_v14 = vld [vmem:[%s696_s0 + $0x25] sm:$0x2]   ;;  %v383_v17 = vld [vmem:[%s696_s0 + $0x5] sm:$0x1]  }
  0x17   :  { %v254_v15 = vsel %vm5_vm0, %v380_v12, %v379_v11  ;;  %v264_v16 = vsel %vm5_vm0, %v382_v14, %v381_v13  ;;  %v384_v18 = vld [vmem:[%s696_s0 + $0x24] sm:$0x2]   ;;  %v385_v19 = vld [vmem:[%s696_s0 + $0x4] sm:$0x1]   ;;  %s450_s2 = smov 24   ;;  %s452_s12 = smov 16  }
  0x18   :  { %115 = vrot.lane.b32.xlu0 %v114_v34, %s435_s14  ;;  %125 = vrot.lane.b32.xlu1 %v124_v35, %s436_s15  ;;  %v386_v20 = vld [vmem:[%s696_s0 + $0x23] sm:$0x2]   ;;  %v274_v21 = vsel %vm5_vm0, %v384_v18, %v383_v17  ;;  %v387_v23 = vld [vmem:[%s696_s0 + $0x3] sm:$0x1]   ;;  %s454_s17 = smov 8   ;;  %s455_s18 = smov 4  }
  0x19   :  { %v284_v22 = vsel %vm5_vm0, %v386_v20, %v385_v19  ;;  %v388_v24 = vld [vmem:[%s696_s0 + $0x22] sm:$0x2]   ;;  %v389_v25 = vld [vmem:[%s696_s0 + $0x2] sm:$0x1]   ;;  %v391_v29 = vld [vmem:[%s696_s0 + $0x1] sm:$0x1]  }
  0x1a   :  { %v390_v26 = vld [vmem:[%s696_s0 + $0x21] sm:$0x2]   ;;  %v294_v27 = vsel %vm5_vm0, %v388_v24, %v387_v23  ;;  %v392_v30 = vld [vmem:[%s696_s0 + $0x20] sm:$0x2]   ;;  %s453_s0 = smov 12   ;;  %vm37_vm4 = vcmask 982944  }
  0x1b   :  { %v304_v28 = vsel %vm5_vm0, %v390_v26, %v389_v25  ;;  %v314_v31 = vsel %vm5_vm0, %v392_v30, %v391_v29  ;;  %vm47_vm5 = vcmask 950144   ;;  %vm57_vm6 = vcmask 917344  }
  0x1c   :  { %135 = vrot.lane.b32.xlu0 %v134_v40, %s437_s24  ;;  %145 = vrot.lane.b32.xlu1 %v144_v41, %s438_s29  ;;  %s443_s29 = smov 52   ;;  %vm67_vm7 = vcmask 884544   ;;  %vm77_vm8 = vcmask 851744   ;;  %vm87_vm9 = vcmask 818944   ;;  %vm97_vm10 = vcmask 786144  }
  0x1d   :  { %vm107_vm11 = vcmask 753344   ;;  %vm117_vm12 = vcmask 720544   ;;  %vm127_vm13 = vcmask 687744   ;;  %vm137_vm14 = vcmask 654944  }
  0x1e   :  { %vm147_vm15 = vcmask 622144   ;;  %vm157_vm0 = vcmask 589344   ;;  %vm167_vm1 = vcmask 556544  }
  0x20   :  { %155 = vrot.lane.b32.xlu0 %v154_v48, %s439_s9  ;;  %165 = vrot.lane.b32.xlu1 %v164_v50, %s440_s10  ;;  %s445_s10 = smov 44  }
  0x24   :  { %175 = vrot.lane.b32.xlu0 %v174_v55, %s441_s19  ;;  %185 = vrot.lane.b32.xlu1 %v184_v56, %s442_s20  ;;  %s447_s20 = smov 36  }
  0x28   :  { %195 = vrot.lane.b32.xlu0 %v194_v61, %s443_s29  ;;  %205 = vrot.lane.b32.xlu1 %v204_v62, %s444_s30  ;;  %s449_s30 = smov 28  }
  0x2c   :  { %215 = vrot.lane.b32.xlu0 %v214_v3, %s445_s10  ;;  %225 = vrot.lane.b32.xlu1 %v224_v4, %s446_s11  ;;  %s451_s11 = smov 20  }
  0x30   :  { %235 = vrot.lane.b32.xlu0 %v234_v9, %s447_s20  ;;  %245 = vrot.lane.b32.xlu1 %v244_v10, %s448_s21 }
  0x34   :  { %255 = vrot.lane.b32.xlu0 %v254_v15, %s449_s30  ;;  %265 = vrot.lane.b32.xlu1 %v264_v16, %s450_s2 }
  0x38   :  { %275 = vrot.lane.b32.xlu0 %v274_v21, %s451_s11  ;;  %285 = vrot.lane.b32.xlu1 %v284_v22, %s452_s12 }
  0x3c   :  { %295 = vrot.lane.b32.xlu0 %v294_v27, %s453_s0  ;;  %305 = vrot.lane.b32.xlu1 %v304_v28, %s454_s17 }
  0x40   :  { %315 = vrot.lane.b32.xlu0 %v314_v31, %s455_s18 }
  0x76   :  { %v16_v32 = vpop.permute.xlu0 %15   ;;  %v36_v33 = vpop.permute.xlu1 %35  }
  0x77   :  { %18 = vst.msk [vmem:[#allocation0] ss:$8 sm:$0x3] %vm17_vm2, %v16_v32   ;;  %vm177_vm2 = vcmask 523744  }
  0x7a   :  { %v26_v34 = vpop.permute.xlu0 %25   ;;  %v46_v35 = vpop.permute.xlu1 %45  }
  0x7b   :  { %28 = vst.msk [vmem:[#allocation0] ss:$8 sm:$0x3] %vm27_vm3, %v26_v34   ;;  %vm187_vm3 = vcmask 490944  }
  0x7c   :  { %38 = vst.msk [vmem:[#allocation0] ss:$8 sm:$0x3] %vm37_vm4, %v36_v33   ;;  %vm197_vm4 = vcmask 458144  }
  0x7d   :  { %48 = vst.msk [vmem:[#allocation0] ss:$8 sm:$0x3] %vm47_vm5, %v46_v35   ;;  %vm207_vm5 = vcmask 425344  }
  0x7e   :  { %v56_v36 = vpop.permute.xlu0 %55   ;;  %v66_v37 = vpop.permute.xlu1 %65  }
  0x7f   :  { %58 = vst.msk [vmem:[#allocation0] ss:$8 sm:$0x3] %vm57_vm6, %v56_v36   ;;  %vm217_vm6 = vcmask 392544  }
  0x80   :  { %68 = vst.msk [vmem:[#allocation0] ss:$8 sm:$0x3] %vm67_vm7, %v66_v37   ;;  %vm227_vm7 = vcmask 359744  }
  0x82   :  { %v76_v38 = vpop.permute.xlu0 %75   ;;  %v86_v39 = vpop.permute.xlu1 %85  }
  0x83   :  { %78 = vst.msk [vmem:[#allocation0] ss:$8 sm:$0x3] %vm77_vm8, %v76_v38   ;;  %vm237_vm8 = vcmask 326944  }
  0x84   :  { %88 = vst.msk [vmem:[#allocation0] ss:$8 sm:$0x3] %vm87_vm9, %v86_v39   ;;  %vm247_vm9 = vcmask 294144  }
  0x86   :  { %v96_v40 = vpop.permute.xlu0 %95   ;;  %v106_v41 = vpop.permute.xlu1 %105  }
  0x87   :  { %98 = vst.msk [vmem:[#allocation0] ss:$8 sm:$0x3] %vm97_vm10, %v96_v40   ;;  %vm257_vm10 = vcmask 261344  }
  0x88   :  { %108 = vst.msk [vmem:[#allocation0] ss:$8 sm:$0x3] %vm107_vm11, %v106_v41   ;;  %vm267_vm11 = vcmask 228544  }
  0x8a   :  { %v116_v42 = vpop.permute.xlu0 %115   ;;  %v126_v43 = vpop.permute.xlu1 %125  }
  0x8b   :  { %118 = vst.msk [vmem:[#allocation0] ss:$8 sm:$0x3] %vm117_vm12, %v116_v42   ;;  %vm277_vm12 = vcmask 195744  }
  0x8c   :  { %128 = vst.msk [vmem:[#allocation0] ss:$8 sm:$0x3] %vm127_vm13, %v126_v43   ;;  %vm287_vm13 = vcmask 162944  }
  0x8e   :  { %v136_v44 = vpop.permute.xlu0 %135   ;;  %v146_v45 = vpop.permute.xlu1 %145  }
  0x8f   :  { %138 = vst.msk [vmem:[#allocation0] ss:$8 sm:$0x3] %vm137_vm14, %v136_v44   ;;  %vm297_vm14 = vcmask 130144  }
  0x90   :  { %148 = vst.msk [vmem:[#allocation0] ss:$8 sm:$0x3] %vm147_vm15, %v146_v45   ;;  %vm307_vm15 = vcmask 97344  }
  0x92   :  { %v156_v46 = vpop.permute.xlu0 %155   ;;  %v166_v47 = vpop.permute.xlu1 %165  }
  0x93   :  { %158 = vst.msk [vmem:[#allocation0] ss:$8 sm:$0x3] %vm157_vm0, %v156_v46   ;;  %vm317_vm0 = vcmask 64544  }
  0x94   :  { %168 = vst.msk [vmem:[#allocation0] ss:$8 sm:$0x3] %vm167_vm1, %v166_v47  }
  0x96   :  { %v176_v48 = vpop.permute.xlu0 %175   ;;  %v186_v49 = vpop.permute.xlu1 %185  }
  0x97   :  { %178 = vst.msk [vmem:[#allocation0] ss:$8 sm:$0x3] %vm177_vm2, %v176_v48  }
  0x98   :  { %188 = vst.msk [vmem:[#allocation0] ss:$8 sm:$0x3] %vm187_vm3, %v186_v49  }
  0x9a   :  { %v196_v50 = vpop.permute.xlu0 %195   ;;  %v206_v51 = vpop.permute.xlu1 %205  }
  0x9b   :  { %198 = vst.msk [vmem:[#allocation0] ss:$8 sm:$0x3] %vm197_vm4, %v196_v50  }
  0x9c   :  { %208 = vst.msk [vmem:[#allocation0] ss:$8 sm:$0x3] %vm207_vm5, %v206_v51  }
  0x9e   :  { %v216_v52 = vpop.permute.xlu0 %215   ;;  %v226_v53 = vpop.permute.xlu1 %225  }
  0x9f   :  { %218 = vst.msk [vmem:[#allocation0] ss:$8 sm:$0x3] %vm217_vm6, %v216_v52  }
  0xa0   :  { %228 = vst.msk [vmem:[#allocation0] ss:$8 sm:$0x3] %vm227_vm7, %v226_v53  }
  0xa2   :  { %v236_v54 = vpop.permute.xlu0 %235   ;;  %v246_v55 = vpop.permute.xlu1 %245  }
  0xa3   :  { %238 = vst.msk [vmem:[#allocation0] ss:$8 sm:$0x3] %vm237_vm8, %v236_v54  }
  0xa4   :  { %248 = vst.msk [vmem:[#allocation0] ss:$8 sm:$0x3] %vm247_vm9, %v246_v55  }
  0xa6   :  { %v256_v56 = vpop.permute.xlu0 %255   ;;  %v266_v57 = vpop.permute.xlu1 %265  }
  0xa7   :  { %258 = vst.msk [vmem:[#allocation0] ss:$8 sm:$0x3] %vm257_vm10, %v256_v56  }
  0xa8   :  { %268 = vst.msk [vmem:[#allocation0] ss:$8 sm:$0x3] %vm267_vm11, %v266_v57  }
  0xaa   :  { %v276_v58 = vpop.permute.xlu0 %275   ;;  %v286_v59 = vpop.permute.xlu1 %285  }
  0xab   :  { %278 = vst.msk [vmem:[#allocation0] ss:$8 sm:$0x3] %vm277_vm12, %v276_v58  }
  0xac   :  { %288 = vst.msk [vmem:[#allocation0] ss:$8 sm:$0x3] %vm287_vm13, %v286_v59  }
  0xae   :  { %v296_v60 = vpop.permute.xlu0 %295   ;;  %v306_v61 = vpop.permute.xlu1 %305  }
  0xaf   :  { %298 = vst.msk [vmem:[#allocation0] ss:$8 sm:$0x3] %vm297_vm14, %v296_v60  }
  0xb0   :  { %308 = vst.msk [vmem:[#allocation0] ss:$8 sm:$0x3] %vm307_vm15, %v306_v61  }
  0xb2   :  { %v316_v62 = vpop.permute.xlu0 %315  }
  0xb3   :  { %318 = vst.msk [vmem:[#allocation0] ss:$8 sm:$0x3] %vm317_vm0, %v316_v62  }
  0xba   :  { %v322_v63 = vld [vmem:[#allocation0] sm:$0x1]  ;;  %v326_v0 = vld [vmem:[#allocation0 + $0x8] sm:$0x1] }
  0xbb   :  { %324 = vst [vmem:[%s697_s1] sm:$0x1] %v322_v63  ;;  %393 = vst [vmem:[%s697_s1 + $0x1] sm:$0x1] %v326_v0 }

// kernel: decoder_block_forward.3
= control target key start
LH: loop header
LB: loop body
LE: loop exit
PB: predicated region body
PF: predicated region fallthrough
CT: control target
= control target key end

     0   :  { %s452_s12 = smov 0   ;;  %s576_s0 = inlined_call_operand.vmem [shape: f32[2,16,128], index: 0, kind: input, shape index: {}]   ;;  %s577_s1 = inlined_call_operand.vmem [shape: f32[128,256], index: 1, kind: input, shape index: {}]   ;;  %s578_s2 = inlined_call_operand.vmem [shape: f32[1,256], index: 2, kind: input, shape index: {}]   ;;  %s579_s3 = inlined_call_operand.vmem [shape: f32[2,16,256], index: 3, kind: output, shape index: {}]  }
   0x1 LB: > { %s353_s13 = sadd.s32 4294967295, %s429_s12   ;;  %p357_p0 = scmp.ge.s32.totalorder %s429_s12, 1  ;;  %s429_s12 = sphi %s452_s12, %s13_s12  }
   0x2   : > { %p137_p1 = scmp.lt.s32.totalorder %s429_s12, 3 }
   0x4   : > { %p138_p2 = pnand %p357_p0, %p137_p1 }
   0x5   : > { %v174_v0 = vld [vmem:[%s577_s1 + $0x8] sm:$0xff] (!%p138_p2)  ;;  %v176_v1 = vld [vmem:[%s577_s1 + $0x18] sm:$0xff] (!%p138_p2)  ;;  %v173_v2 = vld [vmem:[%s577_s1] sm:$0xff] (!%p138_p2)  ;;  %v431_v7 = vmov (!%p138_p2), 0.0   ;;  %p161_p3 = scmp.lt.s32.totalorder (!%p138_p2), %s353_s13, 1  ;;  %v207_v51 = vlaneseq (!%p138_p2) }
   0x6   : > { %141 = sbr.rel (%p138_p2) target bundleno = 256 (0x100), region = 32  ;;  %v366_v3 = vpack.c.bf16 (!%p138_p2), %v176_v1, %v174_v0  ;;  %v175_v4 = vld [vmem:[%s577_s1 + $0x10] sm:$0xff] (!%p138_p2)  ;;  %v178_v5 = vld [vmem:[%s577_s1 + $0x28] sm:$0xff] (!%p138_p2)  ;;  %v180_v6 = vld [vmem:[%s577_s1 + $0x38] sm:$0xff] (!%p138_p2)  ;;  %281 = vmatprep.mubr.f32.mxu0 (!%p138_p2), %v431_v7  ;;  %287 = vmatprep.mubr.f32.mxu1 (!%p138_p2), %v431_v7 }
   0x7   : > { %v368_v8 = vpack.c.bf16 (!%p138_p2), %v175_v4, %v173_v2  ;;  %v370_v9 = vpack.c.bf16 (!%p138_p2), %v180_v6, %v178_v5  ;;  %v177_v10 = vld [vmem:[%s577_s1 + $0x20] sm:$0xff] (!%p138_p2)  ;;  %v179_v11 = vld [vmem:[%s577_s1 + $0x30] sm:$0xff] (!%p138_p2)  ;;  %v182_v12 = vld [vmem:[%s577_s1 + $0x48] sm:$0xff] (!%p138_p2)  ;;  %v208_v52 = vshrl.u32 (!%p138_p2), %v207_v51, 7 }
   0x8   : > { %367 = vmatprep.subr.bf16.mxu0 (!%p138_p2), %v366_v3  ;;  %398 = vmatprep.subr.bf16.mxu1 (!%p138_p2), %v366_v3  ;;  %v184_v13 = vld [vmem:[%s577_s1 + $0x58] sm:$0xff] (!%p138_p2)  ;;  %v372_v14 = vpack.c.bf16 (!%p138_p2), %v179_v11, %v177_v10  ;;  %v181_v16 = vld [vmem:[%s577_s1 + $0x40] sm:$0xff] (!%p138_p2)  ;;  %v183_v17 = vld [vmem:[%s577_s1 + $0x50] sm:$0xff] (!%p138_p2) }
   0x9   : > { %369 = vmatpush1.bf16.msra.mxu0 (!%p138_p2), %v368_v8  ;;  %406 = vmatpush1.bf16.msra.mxu1 (!%p138_p2), %v368_v8  ;;  %v374_v15 = vpack.c.bf16 (!%p138_p2), %v184_v13, %v182_v12  ;;  %v186_v18 = vld [vmem:[%s577_s1 + $0x68] sm:$0xff] (!%p138_p2)  ;;  %v188_v19 = vld [vmem:[%s577_s1 + $0x78] sm:$0xff] (!%p138_p2)  ;;  %v376_v20 = vpack.c.bf16 (!%p138_p2), %v183_v17, %v181_v16  ;;  %v185_v22 = vld [vmem:[%s577_s1 + $0x60] sm:$0xff] (!%p138_p2)  ;;  %v209_v53 = vsub.s32 (!%p138_p2), 0, %v208_v52  ;;  %v213_v55 = vsub.s32 (!%p138_p2), 1, %v208_v52 }
   0xa   : > { %371 = vmatprep.subr.bf16.mxu0 (!%p138_p2), %v370_v9  ;;  %399 = vmatprep.subr.bf16.mxu1 (!%p138_p2), %v370_v9  ;;  %v378_v21 = vpack.c.bf16 (!%p138_p2), %v188_v19, %v186_v18  ;;  %v187_v23 = vld [vmem:[%s577_s1 + $0x70] sm:$0xff] (!%p138_p2)  ;;  %v190_v24 = vld [vmem:[%s577_s1 + $0x88] sm:$0xff] (!%p138_p2)  ;;  %v192_v25 = vld [vmem:[%s577_s1 + $0x98] sm:$0xff] (!%p138_p2) }
   0xb   : > { %v380_v26 = vpack.c.bf16 (!%p138_p2), %v187_v23, %v185_v22  ;;  %v382_v27 = vpack.c.bf16 (!%p138_p2), %v192_v25, %v190_v24  ;;  %v189_v28 = vld [vmem:[%s577_s1 + $0x80] sm:$0xff] (!%p138_p2)  ;;  %v191_v29 = vld [vmem:[%s577_s1 + $0x90] sm:$0xff] (!%p138_p2)  ;;  %v194_v30 = vld [vmem:[%s577_s1 + $0xa8] sm:$0xff] (!%p138_p2) }
   0xc   : > { %v196_v31 = vld [vmem:[%s577_s1 + $0xb8] sm:$0xff] (!%p138_p2)  ;;  %v384_v32 = vpack.c.bf16 (!%p138_p2), %v191_v29, %v189_v28  ;;  %v193_v34 = vld [vmem:[%s577_s1 + $0xa0] sm:$0xff] (!%p138_p2)  ;;  %v195_v35 = vld [vmem:[%s577_s1 + $0xb0] sm:$0xff] (!%p138_p2) }
   0xd   : > { %373 = vmatpush1.bf16.msra.mxu0 %v372_v14  ;;  %407 = vmatpush1.bf16.msra.mxu1 %v372_v14  ;;  %v386_v33 = vpack.c.bf16 %v196_v31, %v194_v30  ;;  %v198_v36 = vld [vmem:[%s577_s1 + $0xc8] sm:$0xff]  ;;  %v200_v37 = vld [vmem:[%s577_s1 + $0xd8] sm:$0xff]  ;;  %v388_v38 = vpack.c.bf16 %v195_v35, %v193_v34  ;;  %v197_v40 = vld [vmem:[%s577_s1 + $0xc0] sm:$0xff]  ;;  %s581_s13 = smov (!%p161_p3, %s353_s13), 1 }
   0xe   : > { %375 = vmatprep.subr.bf16.mxu0 %v374_v15  ;;  %400 = vmatprep.subr.bf16.mxu1 %v374_v15  ;;  %v390_v39 = vpack.c.bf16 %v200_v37, %v198_v36  ;;  %v199_v41 = vld [vmem:[%s577_s1 + $0xd0] sm:$0xff]  ;;  %v202_v42 = vld [vmem:[%s577_s1 + $0xe8] sm:$0xff]  ;;  %v204_v43 = vld [vmem:[%s577_s1 + $0xf8] sm:$0xff]  ;;  %s364_s28 = sshll.u32 %s581_s13, 4  ;;  %s365_s7 = sshll.u32 %s581_s13, 5 }
   0xf   : > { %v392_v44 = vpack.c.bf16 %v199_v41, %v197_v40  ;;  %v394_v45 = vpack.c.bf16 %v204_v43, %v202_v42  ;;  %v201_v46 = vld [vmem:[%s577_s1 + $0xe0] sm:$0xff]  ;;  %v203_v47 = vld [vmem:[%s577_s1 + $0xf0] sm:$0xff]  ;;  %s165_s4 = scalar_lea.vmem %s576_s0, %s364_s28  ;;  %s170_s10 = scalar_lea.vmem %s579_s3, %s365_s7 }
  0x10   : > { %v396_v48 = vpack.c.bf16 %v203_v47, %v201_v46  ;;  %v171_v49 = vld [vmem:[%s165_s4] sm:$0xff]  ;;  %v172_v50 = vld [vmem:[%s165_s4 + $0x8] sm:$0xff] }
  0x11   : > { %377 = vmatpush1.bf16.msra.mxu0 %v376_v20  ;;  %408 = vmatpush1.bf16.msra.mxu1 %v376_v20  ;;  %v205_v54 = vld [vmem:[%s578_s2] sm:$0x3] }
  0x12   : > { %379 = vmatprep.subr.bf16.mxu0 %v378_v21  ;;  %401 = vmatprep.subr.bf16.mxu1 %v378_v21  ;;  %v210_v56 = vrot.slane %v205_v54, %v209_v53  ;;  %v214_v57 = vrot.slane %v205_v54, %v213_v55 }
  0x15   : > { %381 = vmatpush1.bf16.msra.mxu0 %v380_v26  ;;  %409 = vmatpush1.bf16.msra.mxu1 %v380_v26 }
  0x16   : > { %383 = vmatprep.subr.bf16.mxu0 %v382_v27  ;;  %402 = vmatprep.subr.bf16.mxu1 %v382_v27 }
  0x19   : > { %385 = vmatpush1.bf16.msra.mxu0 %v384_v32  ;;  %410 = vmatpush1.bf16.msra.mxu1 %v384_v32 }
  0x1a   : > { %387 = vmatprep.subr.bf16.mxu0 %v386_v33  ;;  %403 = vmatprep.subr.bf16.mxu1 %v386_v33 }
  0x1d   : > { %389 = vmatpush1.bf16.msra.mxu0 %v388_v38  ;;  %411 = vmatpush1.bf16.msra.mxu1 %v388_v38 }
  0x1e   : > { %391 = vmatprep.subr.bf16.mxu0 %v390_v39  ;;  %404 = vmatprep.subr.bf16.mxu1 %v390_v39 }
  0x21   : > { %393 = vmatpush1.bf16.msra.mxu0 %v392_v44  ;;  %412 = vmatpush1.bf16.msra.mxu1 %v392_v44 }
  0x22   : > { %395 = vmatprep.subr.bf16.mxu0 %v394_v45  ;;  %405 = vmatprep.subr.bf16.mxu1 %v394_v45 }
  0x25   : > { %397 = vmatpush1.bf16.msra.mxu0 %v396_v48  ;;  %413 = vmatpush1.bf16.msra.mxu1 %v396_v48 }
  0x28   : > { %282 = vmatmul.mubr.f32.vlgmr.msra.gmra.mrb[0].mxu0 %v171_v49  ;;  %288 = vmatmul.mubr.f32.vlgmr.msra.gmra.mrb[0].mxu1 %v172_v50 }
  0xfb   : > { %v283_v58 = vpop.f32.mrb[0].mxu0  ;;  %v289_v59 = vpop.f32.mrb[0].mxu1 }
  0xfc   : > { %v284_v60 = vadd.f32 %v283_v58, %v210_v56  ;;  %v290_v61 = vadd.f32 %v289_v59, %v210_v56  ;;  %v285_v62 = vpop.f32.mrb[1].mxu0  ;;  %v291_v63 = vpop.f32.mrb[1].mxu1 }
  0xfd   : > { %v286_v0 = vadd.f32 %v285_v62, %v214_v57  ;;  %v292_v1 = vadd.f32 %v291_v63, %v214_v57 }
  0xfe   : > { %294 = vst [vmem:[%s170_s10] sm:$0xff] %v284_v60  ;;  %296 = vst [vmem:[%s170_s10 + $0x10] sm:$0xff] %v290_v61 }
  0xff   : > { %295 = vst [vmem:[%s170_s10 + $0x8] sm:$0xff] %v286_v0  ;;  %297 = vst [vmem:[%s170_s10 + $0x18] sm:$0xff] %v292_v1 }
 0x100 PF: > { %s13_s12 = sadd.s32 1, %s429_s12  }
 0x101   : > { %p10_p4 = scmp.ge.s32.totalorder %s13_s12, 4  }
 0x103   :  { %12 = sbr.rel (!%p10_p4) target bundleno = 1 (0x1), region = 62 }

// kernel: decoder_block_forward.4
= control target key start
LH: loop header
LB: loop body
LE: loop exit
PB: predicated region body
PF: predicated region fallthrough
CT: control target
= control target key end

     0   :  { %s2330_s27 = smov 0   ;;  %s2880_s0 = inlined_call_operand.vmem [shape: f32[2,32,128], index: 0, kind: input, shape index: {}]   ;;  %s2881_s1 = inlined_call_operand.vmem [shape: f32[2,32,128], index: 1, kind: input, shape index: {}]   ;;  %s2882_s2 = inlined_call_operand.vmem [shape: f32[3,128,128], index: 2, kind: input, shape index: {}]   ;;  %s2883_s3 = inlined_call_operand.vmem [shape: f32[3,128,128], index: 3, kind: input, shape index: {}]   ;;  %s2884_s4 = inlined_call_operand.vmem [shape: f32[128,4], index: 4, kind: input, shape index: {}]   ;;  %s2885_s5 = inlined_call_operand.vmem [shape: f32[4,128], index: 5, kind: input, shape index: {}]   ;;  %s2886_s6 = inlined_call_operand.vmem [shape: f32[2,32,128], index: 6, kind: output, shape index: {0}]   ;;  %s2887_s7 = inlined_call_operand.vmem [shape: f32[2,1,4], index: 7, kind: output, shape index: {1}]   ;;  %s2888_s8 = inlined_call_operand.vmem [shape: f32[2,1,4], index: 8, kind: output, shape index: {2}]  }
   0x1 LB: > { %s1458_s28 = sadd.s32 4294967295, %s2280_s27   ;;  %p1462_p0 = scmp.ge.s32.totalorder %s2280_s27, 1  ;;  %s2280_s27 = sphi %s2330_s27, %s19_s27  }
   0x2   : > { %p277_p1 = scmp.lt.s32.totalorder %s2280_s27, 3 }
   0x4   : > { %p278_p2 = pnand %p1462_p0, %p277_p1 }
   0x5   : > { %v1487_v0 = vld [vmem:[%s2882_s2 + $0x100] sm:$0xff] (!%p278_p2)  ;;  %v1488_v1 = vld [vmem:[%s2882_s2 + $0x108] sm:$0xff] (!%p278_p2)  ;;  %v1489_v2 = vld [vmem:[%s2882_s2 + $0x110] sm:$0xff] (!%p278_p2)  ;;  %p322_p3 = scmp.lt.s32.totalorder (!%p278_p2), %s1458_s28, 1  ;;  %vm351_vm0 = vcmask (!%p278_p2), 1040384   ;;  %vm602_vm1 = vcmask (!%p278_p2), 1045504  }
   0x6   : > { %281 = sbr.rel (%p278_p2) target bundleno = 1034 (0x40a), region = 44  ;;  %v2067_v3 = vpack.c.bf16 (!%p278_p2), %v1488_v1, %v1487_v0  ;;  %v1490_v4 = vld [vmem:[%s2882_s2 + $0x118] sm:$0xff] (!%p278_p2)  ;;  %v1491_v6 = vld [vmem:[%s2882_s2 + $0x120] sm:$0xff] (!%p278_p2)  ;;  %v1492_v7 = vld [vmem:[%s2882_s2 + $0x128] sm:$0xff] (!%p278_p2)  ;;  %vm401_vm2 = vcmask (!%p278_p2), 1046528   ;;  %vm2283_vm4 = vmmov (!%p278_p2), 0  }
   0x7   : > { %v2071_v5 = vpack.c.bf16 (!%p278_p2), %v1490_v4, %v1489_v2  ;;  %v2075_v8 = vpack.c.bf16 (!%p278_p2), %v1492_v7, %v1491_v6  ;;  %v1493_v9 = vld [vmem:[%s2882_s2 + $0x130] sm:$0xff] (!%p278_p2)  ;;  %v1469_v10 = vld [vmem:[%s2882_s2 + $0x80] sm:$0xff] (!%p278_p2)  ;;  %v1470_v11 = vld [vmem:[%s2882_s2 + $0x88] sm:$0xff] (!%p278_p2)  ;;  %vm1173_vm5 = vcmask (!%p278_p2), 1043456   ;;  %vm1338_vm6 = vcmask (!%p278_p2), 24576  }
   0x8   : > { %2068 = vmatprep.subr.bf16.mxu0 (!%p278_p2), %v2067_v3  ;;  %v1494_v12 = vld [vmem:[%s2882_s2 + $0x138] sm:$0xff] (!%p278_p2)  ;;  %v2003_v13 = vpack.c.bf16 (!%p278_p2), %v1470_v11, %v1469_v10  ;;  %v1471_v18 = vld [vmem:[%s2882_s2 + $0x90] sm:$0xff] (!%p278_p2)  ;;  %v1473_v24 = vld [vmem:[%s2882_s2 + $0xa0] sm:$0xff] (!%p278_p2)  ;;  %vm1169_vm7 = vcmask (!%p278_p2), 31744  }
   0x9   : > { %2070 = vmatpush3.bf16.msra.mxu0 (!%p278_p2), %v2067_v3  ;;  %v1472_v19 = vld [vmem:[%s2882_s2 + $0x98] sm:$0xff] (!%p278_p2)  ;;  %v2079_v20 = vpack.c.bf16 (!%p278_p2), %v1494_v12, %v1493_v9  ;;  %v1474_v25 = vld [vmem:[%s2882_s2 + $0xa8] sm:$0xff] (!%p278_p2)  ;;  %v1495_v26 = vld [vmem:[%s2882_s2 + $0x140] sm:$0xff] (!%p278_p2) }
   0xa   : > { %2072 = vmatprep.subr.bf16.mxu0 (!%p278_p2), %v2071_v5  ;;  %2004 = vmatprep.subr.bf16.mxu1 (!%p278_p2), %v2003_v13  ;;  %v2007_v23 = vpack.c.bf16 (!%p278_p2), %v1472_v19, %v1471_v18  ;;  %v1496_v27 = vld [vmem:[%s2882_s2 + $0x148] sm:$0xff] (!%p278_p2)  ;;  %v2011_v30 = vpack.c.bf16 (!%p278_p2), %v1474_v25, %v1473_v24  ;;  %v1475_v33 = vld [vmem:[%s2882_s2 + $0xb0] sm:$0xff] (!%p278_p2)  ;;  %v1476_v34 = vld [vmem:[%s2882_s2 + $0xb8] sm:$0xff] (!%p278_p2) }
   0xb   : > { %2006 = vmatpush3.bf16.msra.mxu1 (!%p278_p2), %v2003_v13  ;;  %v2083_v36 = vpack.c.bf16 (!%p278_p2), %v1496_v27, %v1495_v26  ;;  %v1497_v37 = vld [vmem:[%s2882_s2 + $0x150] sm:$0xff] (!%p278_p2)  ;;  %v1498_v38 = vld [vmem:[%s2882_s2 + $0x158] sm:$0xff] (!%p278_p2)  ;;  %v2015_v40 = vpack.c.bf16 (!%p278_p2), %v1476_v34, %v1475_v33  ;;  %v1477_v41 = vld [vmem:[%s2882_s2 + $0xc0] sm:$0xff] (!%p278_p2) }
   0xc   : > { %2008 = vmatprep.subr.bf16.mxu1 (!%p278_p2), %v2007_v23  ;;  %v1478_v42 = vld [vmem:[%s2882_s2 + $0xc8] sm:$0xff] (!%p278_p2)  ;;  %v2087_v43 = vpack.c.bf16 (!%p278_p2), %v1498_v38, %v1497_v37  ;;  %v1499_v44 = vld [vmem:[%s2882_s2 + $0x160] sm:$0xff] (!%p278_p2)  ;;  %v1479_v52 = vld [vmem:[%s2882_s2 + $0xd0] sm:$0xff] (!%p278_p2) }
   0xd   : > { %s2892_s28 = smov (!%p322_p3, %s1458_s28), 1  ;;  %2074 = vmatpush3.bf16.msra.mxu0 %v2071_v5  ;;  %v1500_v45 = vld [vmem:[%s2882_s2 + $0x168] sm:$0xff]  ;;  %v2019_v49 = vpack.c.bf16 %v1478_v42, %v1477_v41  ;;  %v1480_v53 = vld [vmem:[%s2882_s2 + $0xd8] sm:$0xff]  ;;  %v1501_v58 = vld [vmem:[%s2882_s2 + $0x170] sm:$0xff] }
   0xe   : > { %s2359_s19 = sshll.u32 %s2892_s28, 5  ;;  %2076 = vmatprep.subr.bf16.mxu0 %v2075_v8  ;;  %v2091_v55 = vpack.c.bf16 %v1500_v45, %v1499_v44  ;;  %v1502_v59 = vld [vmem:[%s2882_s2 + $0x178] sm:$0xff]  ;;  %v2023_v62 = vpack.c.bf16 %v1480_v53, %v1479_v52  ;;  %v1481_v63 = vld [vmem:[%s2882_s2 + $0xe0] sm:$0xff]  ;;  %v1482_v0 = vld [vmem:[%s2882_s2 + $0xe8] sm:$0xff]  ;;  %s339_s17 = scalar_lea.vmem %s2887_s7, %s2892_s28 }
   0xf   : > { %s2374_s30 = scalar_lea.vmem %s2880_s0, %s2359_s19  ;;  %2010 = vmatpush3.bf16.msra.mxu1 %v2007_v23  ;;  %s2436_s15 = scalar_lea.vmem %s2881_s1, %s2359_s19  ;;  %v2095_v2 = vpack.c.bf16 %v1502_v59, %v1501_v58  ;;  %v1503_v3 = vld [vmem:[%s2883_s3 + $0x80] sm:$0xff]  ;;  %v1504_v4 = vld [vmem:[%s2883_s3 + $0x88] sm:$0xff]  ;;  %v1505_v11 = vld [vmem:[%s2883_s3 + $0x90] sm:$0xff]  ;;  %v2027_v13 = vpack.c.bf16 %v1482_v0, %v1481_v63 }
  0x10   : > { %v343_v14 = vld [vmem:[%s2374_s30] sm:$0xff]  ;;  %v2381_v15 = vld [vmem:[%s2374_s30 + $0x8] sm:$0xff]  ;;  %2012 = vmatprep.subr.bf16.mxu1 %v2011_v30  ;;  %v345_v46 = vld [vmem:[%s2374_s30 + $0x10] sm:$0xff]  ;;  %s336_s12 = scalar_lea.vmem %s2886_s6, %s2359_s19  ;;  %s342_s21 = scalar_lea.vmem %s2888_s8, %s2892_s28 }
  0x11   : > { %v2383_v16 = vrot.slane %v343_v14, 7  ;;  %v353_v17 = vrot.slane %v2381_v15, 7  ;;  %2078 = vmatpush3.bf16.msra.mxu0 %v2075_v8  ;;  %v705_v47 = vld [vmem:[%s2436_s15] sm:$0xff]  ;;  %v706_v48 = vld [vmem:[%s2436_s15 + $0x8] sm:$0xff]  ;;  %v346_v50 = vld [vmem:[%s2374_s30 + $0x18] sm:$0xff]  ;;  %v355_v56 = vrot.slane %v345_v46, 7  ;;  %v2099_v15 = vpack.c.bf16 %v1504_v4, %v1503_v3 }
  0x12   : > { %2080 = vmatprep.subr.bf16.mxu0 %v2079_v20  ;;  %v707_v51 = vld [vmem:[%s2436_s15 + $0x10] sm:$0xff]  ;;  %v2461_v54 = vrot.slane %v705_v47, 7  ;;  %v714_v57 = vrot.slane %v706_v48, 7  ;;  %v357_v60 = vrot.slane %v346_v50, 7  ;;  %v1506_v12 = vld [vmem:[%s2883_s3 + $0x98] sm:$0xff]  ;;  %v366_v33 = vld [vmem:[%s2882_s2] sm:$0xff] }
  0x13   : > { %v2396_v21 = vsel %vm351_vm0, %v2383_v16, %v353_v17  ;;  %v364_v22 = vsel %vm351_vm0, 0.0, %v2383_v16  ;;  %2014 = vmatpush3.bf16.msra.mxu1 %v2011_v30  ;;  %v716_v61 = vrot.slane %v707_v51, 7  ;;  %v2488_v5 = vsel %vm351_vm0, %v353_v17, %v355_v56  ;;  %v1483_v18 = vld [vmem:[%s2882_s2 + $0xf0] sm:$0xff]  ;;  %v1484_v19 = vld [vmem:[%s2882_s2 + $0xf8] sm:$0xff]  ;;  %v367_v34 = vld [vmem:[%s2882_s2 + $0x8] sm:$0xff] }
  0x14   : > { %v603_v28 = vrot.slane %v364_v22, 2  ;;  %v604_v29 = vrot.slane %v2396_v21, 2  ;;  %v402_v31 = vrot.slane %v364_v22, 1  ;;  %v403_v35 = vrot.slane %v2396_v21, 1  ;;  %2016 = vmatprep.subr.bf16.mxu1 %v2015_v40  ;;  %v1507_v41 = vld [vmem:[%s2883_s3 + $0xa0] sm:$0xff]  ;;  %v1508_v42 = vld [vmem:[%s2883_s3 + $0xa8] sm:$0xff]  ;;  %vm2593_vm3 = vmneg %vm351_vm0 }
  0x15   : > { %2082 = vmatpush3.bf16.msra.mxu0 %v2079_v20  ;;  %v2477_v1 = vsel %vm351_vm0, 0.0, %v2461_v54  ;;  %v2492_v6 = vsel %vm351_vm0, %v2461_v54, %v714_v57  ;;  %v2496_v8 = vsel %vm351_vm0, %v355_v56, %v357_v60  ;;  %v2499_v9 = vsel %vm351_vm0, %v714_v57, %v716_v61  ;;  %v708_v20 = vld [vmem:[%s2436_s15 + $0x18] sm:$0xff]  ;;  %v1509_v53 = vld [vmem:[%s2883_s3 + $0xb0] sm:$0xff]  ;;  %v1512_v63 = vld [vmem:[%s2883_s3 + $0xc8] sm:$0xff] }
  0x16   : > { %v605_v32 = vsel %vm602_vm1, %v603_v28, %v604_v29  ;;  %v404_v39 = vsel %vm401_vm2, %v402_v31, %v403_v35  ;;  %2084 = vmatprep.subr.bf16.mxu0 %v2083_v36  ;;  %v962_v7 = vrot.slane %v2477_v1, 2  ;;  %v963_v10 = vrot.slane %v2492_v6, 2  ;;  %v369_v50 = vld [vmem:[%s2882_s2 + $0x18] sm:$0xff]  ;;  %v372_v3 = vld [vmem:[%s2882_s2 + $0x30] sm:$0xff] }
  0x17   : > { %1808 = vmatprep.mubr.f32.mxu0 %v605_v32  ;;  %1732 = vmatprep.mubr.f32.mxu1 %v404_v39  ;;  %v965_v14 = vrot.slane %v2499_v9, 2  ;;  %v606_v17 = vrot.slane %v2488_v5, 2  ;;  %v608_v23 = vrot.slane %v2496_v8, 2  ;;  %v365_v24 = vsel %vm351_vm0, %v357_v60, 0.0  ;;  %v370_v60 = vld [vmem:[%s2882_s2 + $0x20] sm:$0xff]  ;;  %v373_v4 = vld [vmem:[%s2882_s2 + $0x38] sm:$0xff] }
  0x18   : > { %2018 = vmatpush3.bf16.msra.mxu1 %v2015_v40  ;;  %v2518_v22 = vsel %vm602_vm1, %v962_v7, %v963_v10  ;;  %v718_v25 = vrot.slane %v708_v20, 7  ;;  %v2103_v27 = vpack.c.bf16 %v1506_v12, %v1505_v11  ;;  %v2031_v28 = vpack.c.bf16 %v1484_v19, %v1483_v18  ;;  %v1514_v11 = vld [vmem:[%s2883_s3 + $0xd8] sm:$0xff]  ;;  %v376_v19 = vld [vmem:[%s2882_s2 + $0x50] sm:$0xff] }
  0x19   : > { %2086 = vmatpush3.bf16.msra.mxu0 %v2083_v36  ;;  %2020 = vmatprep.subr.bf16.mxu1 %v2019_v49  ;;  %v2523_v26 = vsel %vm602_vm1, %v963_v10, %v965_v14  ;;  %v607_v31 = vsel %vm602_vm1, %v604_v29, %v606_v17  ;;  %v610_v32 = vrot.slane %v365_v24, 2  ;;  %v609_v38 = vsel %vm602_vm1, %v606_v17, %v608_v23  ;;  %v1513_v10 = vld [vmem:[%s2883_s3 + $0xd0] sm:$0xff]  ;;  %v1515_v17 = vld [vmem:[%s2883_s3 + $0xe0] sm:$0xff]  ;;  %v377_v20 = vld [vmem:[%s2882_s2 + $0x58] sm:$0xff] }
  0x1a   : > { %2088 = vmatprep.subr.bf16.mxu0 %v2087_v43  ;;  %v2526_v30 = vsel %vm351_vm0, %v716_v61, %v718_v25  ;;  %v2538_v36 = vsel %vm351_vm0, %v718_v25, 0.0  ;;  %v762_v39 = vrot.slane %v2477_v1, 1  ;;  %v763_v29 = vrot.slane %v2492_v6, 1  ;;  %v371_v61 = vld [vmem:[%s2882_s2 + $0x28] sm:$0xff]  ;;  %v1518_v25 = vld [vmem:[%s2883_s3 + $0xf8] sm:$0xff] }
  0x1b   : > { %v967_v37 = vrot.slane %v2526_v30, 2  ;;  %v969_v40 = vrot.slane %v2538_v36, 2  ;;  %v2035_v45 = vpack.c.bf16 %v367_v34, %v366_v33  ;;  %v407_v46 = vrot.slane %v2496_v8, 1  ;;  %v727_v33 = vld [vmem:[%s2883_s3] sm:$0xff]  ;;  %v728_v34 = vld [vmem:[%s2883_s3 + $0x8] sm:$0xff] }
  0x1c   : > { %2022 = vmatpush3.bf16.msra.mxu1 %v2019_v49  ;;  %v611_v48 = vsel %vm602_vm1, %v608_v23, %v610_v32  ;;  %v368_v49 = vld [vmem:[%s2882_s2 + $0x10] sm:$0xff]  ;;  %v2107_v51 = vpack.c.bf16 %v1508_v42, %v1507_v41  ;;  %v764_v52 = vsel %vm401_vm2, %v762_v39, %v763_v29  ;;  %v409_v57 = vrot.slane %v365_v24, 1 }
  0x1d   : > { %2090 = vmatpush3.bf16.msra.mxu0 %v2087_v43  ;;  %2024 = vmatprep.subr.bf16.mxu1 %v2023_v62  ;;  %v405_v43 = vrot.slane %v2488_v5, 1  ;;  %v2553_v44 = vsel %vm602_vm1, %v965_v14, %v967_v37  ;;  %v2557_v47 = vsel %vm602_vm1, %v967_v37, %v969_v40  ;;  %v2039_v58 = vpack.c.bf16 %v369_v50, %v368_v49  ;;  %v375_v14 = vld [vmem:[%s2882_s2 + $0x48] sm:$0xff]  ;;  %v1517_v24 = vld [vmem:[%s2883_s3 + $0xf0] sm:$0xff]  ;;  %v381_v40 = vld [vmem:[%s2882_s2 + $0x78] sm:$0xff] }
  0x1e   : > { %2092 = vmatprep.subr.bf16.mxu0 %v2091_v55  ;;  %v410_v0 = vsel %vm401_vm2, %v407_v46, %v409_v57  ;;  %v2043_v1 = vpack.c.bf16 %v371_v61, %v370_v60  ;;  %v2047_v12 = vpack.c.bf16 %v373_v4, %v372_v3  ;;  %v2127_v32 = vpack.c.bf16 %v1518_v25, %v1517_v24  ;;  %v380_v39 = vld [vmem:[%s2882_s2 + $0x70] sm:$0xff]  ;;  %v1536_v25 = vld [vmem:[%s2883_s3 + $0x178] sm:$0xff] }
  0x1f   : > { %v406_v56 = vsel %vm401_vm2, %v403_v35, %v405_v43  ;;  %v408_v59 = vsel %vm401_vm2, %v405_v43, %v407_v46  ;;  %v1511_v35 = vld [vmem:[%s2883_s3 + $0xc0] sm:$0xff]  ;;  %v2131_v41 = vpack.c.bf16 %v728_v34, %v727_v33  ;;  %v767_v42 = vrot.slane %v2526_v30, 1  ;;  %v729_v43 = vld [vmem:[%s2883_s3 + $0x10] sm:$0xff] }
  0x20   : > { %2026 = vmatpush3.bf16.msra.mxu1 %v2023_v62  ;;  %v2115_v7 = vpack.c.bf16 %v1512_v63, %v1511_v35  ;;  %v2063_v46 = vpack.c.bf16 %v381_v40, %v380_v39  ;;  %v769_v49 = vrot.slane %v2538_v36, 1  ;;  %v741_v35 = vld [vmem:[%s2883_s3 + $0x70] sm:$0xff]  ;;  %v742_v63 = vld [vmem:[%s2883_s3 + $0x78] sm:$0xff]  ;;  %v1076_v34 = vld [vmem:[%s2884_s4 + $0x20] sm:$0xff] }
  0x21   : > { %2094 = vmatpush3.bf16.msra.mxu0 %v2091_v55  ;;  %2028 = vmatprep.subr.bf16.mxu1 %v2027_v13  ;;  %v1510_v55 = vld [vmem:[%s2883_s3 + $0xb8] sm:$0xff]  ;;  %v1523_v4 = vld [vmem:[%s2883_s3 + $0x110] sm:$0xff] }
  0x22   : > { %2096 = vmatprep.subr.bf16.mxu0 %v2095_v2  ;;  %v2111_v62 = vpack.c.bf16 %v1510_v55, %v1509_v53  ;;  %v732_v53 = vld [vmem:[%s2883_s3 + $0x28] sm:$0xff]  ;;  %v733_v55 = vld [vmem:[%s2883_s3 + $0x30] sm:$0xff]  ;;  %v1079_v40 = vld [vmem:[%s2884_s4 + $0x38] sm:$0xff] }
  0x23   : > { %v1535_v24 = vld [vmem:[%s2883_s3 + $0x170] sm:$0xff] }
  0x24   : > { %2030 = vmatpush3.bf16.msra.mxu1 %v2027_v13  ;;  %v374_v13 = vld [vmem:[%s2882_s2 + $0x40] sm:$0xff]  ;;  %v1078_v39 = vld [vmem:[%s2884_s4 + $0x30] sm:$0xff] }
  0x25   : > { %2098 = vmatpush3.bf16.msra.mxu0 %v2095_v2  ;;  %2032 = vmatprep.subr.bf16.mxu1 %v2031_v28  ;;  %v2051_v18 = vpack.c.bf16 %v375_v14, %v374_v13  ;;  %v1522_v2 = vld [vmem:[%s2883_s3 + $0x108] sm:$0xff]  ;;  %v1527_v14 = vld [vmem:[%s2883_s3 + $0x130] sm:$0xff] }
  0x26   : > { %2100 = vmatprep.subr.bf16.mxu0 %v2099_v15 }
  0x28   : > { %1809 = vmatmul.mubr.f32.vlgmr.msra.gmra.mrb[0].mxu0 %v607_v31  ;;  %2034 = vmatpush3.bf16.msra.mxu1 %v2031_v28  ;;  %v378_v28 = vld [vmem:[%s2882_s2 + $0x60] sm:$0xff]  ;;  %v379_v31 = vld [vmem:[%s2882_s2 + $0x68] sm:$0xff] }
  0x29   : > { %2102 = vmatpush3.bf16.msra.mxu0 %v2099_v15  ;;  %1811 = vmatprep.mubr.f32.mxu0 %v609_v38  ;;  %v2119_v15 = vpack.c.bf16 %v1514_v11, %v1513_v10  ;;  %v2059_v37 = vpack.c.bf16 %v379_v31, %v378_v28  ;;  %v765_v38 = vrot.slane %v2499_v9, 1  ;;  %v1525_v11 = vld [vmem:[%s2883_s3 + $0x120] sm:$0xff]  ;;  %v1073_v31 = vld [vmem:[%s2884_s4 + $0x8] sm:$0xff] }
  0x2a   : > { %2104 = vmatprep.subr.bf16.mxu0 %v2103_v27  ;;  %2036 = vmatprep.subr.bf16.mxu1 %v2035_v45  ;;  %v1072_v28 = vld [vmem:[%s2884_s4] sm:$0xff] }
  0x2b   : > { %1733 = vmatmul.mubr.f32.vlgmr.msra.gmra.mrb[0].mxu1 %v406_v56  ;;  %v734_v56 = vld [vmem:[%s2883_s3 + $0x38] sm:$0xff]  ;;  %v2772_v33 = vpack.c.bf16 %v1073_v31, %v1072_v28 }
  0x2c   : > { %1812 = vmatmul.mubr.f32.gmra.mrb[2].mxu0 %v611_v48  ;;  %2038 = vmatpush3.bf16.msra.mxu1 %v2035_v45  ;;  %v730_v45 = vld [vmem:[%s2883_s3 + $0x18] sm:$0xff]  ;;  %v766_v48 = vsel %vm401_vm2, %v763_v29, %v765_v38  ;;  %v770_v29 = vsel %vm401_vm2, %v767_v42, %v769_v49  ;;  %v2143_v57 = vpack.c.bf16 %v734_v56, %v733_v55  ;;  %v2284_v55 = vmov 0.0  }
  0x2d   : > { %2106 = vmatpush3.bf16.msra.mxu0 %v2103_v27  ;;  %1846 = vmatprep.mubr.f32.mxu0 %v764_v52  ;;  %v2055_v27 = vpack.c.bf16 %v377_v20, %v376_v19  ;;  %v2135_v50 = vpack.c.bf16 %v730_v45, %v729_v43  ;;  %v731_v52 = vld [vmem:[%s2883_s3 + $0x20] sm:$0xff]  ;;  %v1534_v20 = vld [vmem:[%s2883_s3 + $0x168] sm:$0xff] }
  0x2e   : > { %2108 = vmatprep.subr.bf16.mxu0 %v2107_v51  ;;  %1735 = vmatprep.mubr.f32.mxu1 %v408_v59  ;;  %v2139_v36 = vpack.c.bf16 %v732_v53, %v731_v52  ;;  %v736_v59 = vld [vmem:[%s2883_s3 + $0x48] sm:$0xff]  ;;  %v1533_v19 = vld [vmem:[%s2883_s3 + $0x160] sm:$0xff]  ;;  %v1086_v53 = vld [vmem:[%s2884_s4 + $0x70] sm:$0xff] }
  0x2f   : > { %2040 = vmatprep.subr.bf16.mxu1 %v2039_v58  ;;  %1736 = vmatmul.mubr.f32.gmra.mrb[2].mxu1 %v410_v0  ;;  %v2159_v0 = vpack.c.bf16 %v742_v63, %v741_v35  ;;  %v1081_v43 = vld [vmem:[%s2884_s4 + $0x48] sm:$0xff] }
  0x30   : > { %2042 = vmatpush3.bf16.msra.mxu1 %v2039_v58  ;;  %1770 = vmatprep.mubr.msk.f32.mxu1 %vm2593_vm3, %v2383_v16  ;;  %v1516_v16 = vld [vmem:[%s2883_s3 + $0xe8] sm:$0xff]  ;;  %v735_v58 = vld [vmem:[%s2883_s3 + $0x40] sm:$0xff] }
  0x31   : > { %2110 = vmatpush3.bf16.msra.mxu0 %v2107_v51  ;;  %2044 = vmatprep.subr.bf16.mxu1 %v2043_v1  ;;  %v2123_v23 = vpack.c.bf16 %v1516_v16, %v1515_v17  ;;  %v768_v51 = vsel %vm401_vm2, %v765_v38, %v767_v42  ;;  %v2147_v60 = vpack.c.bf16 %v736_v59, %v735_v58  ;;  %v1530_v17 = vld [vmem:[%s2883_s3 + $0x148] sm:$0xff]  ;;  %v1080_v42 = vld [vmem:[%s2884_s4 + $0x40] sm:$0xff] }
  0x32   : > { %2112 = vmatprep.subr.bf16.mxu0 %v2111_v62  ;;  %v2812_v45 = vpack.c.bf16 %v1081_v43, %v1080_v42 }
  0x34   : > { %2046 = vmatpush3.bf16.msra.mxu1 %v2043_v1  ;;  %v1521_v1 = vld [vmem:[%s2883_s3 + $0x100] sm:$0xff] }
  0x35   : > { %2114 = vmatpush3.bf16.msra.mxu0 %v2111_v62  ;;  %2048 = vmatprep.subr.bf16.mxu1 %v2047_v12  ;;  %v740_v62 = vld [vmem:[%s2883_s3 + $0x68] sm:$0xff]  ;;  %v2163_v3 = vpack.c.bf16 %v1522_v2, %v1521_v1 }
  0x36   : > { %2116 = vmatprep.subr.bf16.mxu0 %v2115_v7 }
  0x38   : > { %2050 = vmatpush3.bf16.msra.mxu1 %v2047_v12  ;;  %v1526_v12 = vld [vmem:[%s2883_s3 + $0x128] sm:$0xff] }
  0x39   : > { %2118 = vmatpush3.bf16.msra.mxu0 %v2115_v7  ;;  %2052 = vmatprep.subr.bf16.mxu1 %v2051_v18  ;;  %v1524_v7 = vld [vmem:[%s2883_s3 + $0x118] sm:$0xff]  ;;  %v2171_v13 = vpack.c.bf16 %v1526_v12, %v1525_v11  ;;  %v1088_v12 = vld [vmem:[%s2885_s5] sm:$0xf] }
  0x3a   : > { %2120 = vmatprep.subr.bf16.mxu0 %v2119_v15  ;;  %v2167_v10 = vpack.c.bf16 %v1524_v7, %v1523_v4 }
  0x3c   : > { %2054 = vmatpush3.bf16.msra.mxu1 %v2051_v18 }
  0x3d   : > { %2122 = vmatpush3.bf16.msra.mxu0 %v2119_v15  ;;  %2056 = vmatprep.subr.bf16.mxu1 %v2055_v27  ;;  %v1528_v15 = vld [vmem:[%s2883_s3 + $0x138] sm:$0xff] }
  0x3e   : > { %2124 = vmatprep.subr.bf16.mxu0 %v2123_v23 }
  0x40   : > { %2058 = vmatpush3.bf16.msra.mxu1 %v2055_v27  ;;  %v2191_v27 = vpack.c.bf16 %v1536_v25, %v1535_v24 }
  0x41   : > { %2126 = vmatpush3.bf16.msra.mxu0 %v2123_v23  ;;  %2060 = vmatprep.subr.bf16.mxu1 %v2059_v37  ;;  %v2187_v23 = vpack.c.bf16 %v1534_v20, %v1533_v19 }
  0x42   : > { %2128 = vmatprep.subr.bf16.mxu0 %v2127_v32 }
  0x44   : > { %2062 = vmatpush3.bf16.msra.mxu1 %v2059_v37  ;;  %v1077_v37 = vld [vmem:[%s2884_s4 + $0x28] sm:$0xff] }
  0x45   : > { %2130 = vmatpush3.bf16.msra.mxu0 %v2127_v32  ;;  %2064 = vmatprep.subr.bf16.mxu1 %v2063_v46  ;;  %v2282_v32 = vmov 0.0|0.0   ;;  %v2792_v38 = vpack.c.bf16 %v1077_v37, %v1076_v34 }
  0x46   : > { %2132 = vmatprep.subr.bf16.mxu0 %v2131_v41 }
  0x48   : > { %1847 = vmatmul.mubr.f32.vlgmr.msra.gmra.mrb[0].mxu0 %v766_v48  ;;  %2066 = vmatpush3.bf16.msra.mxu1 %v2063_v46  ;;  %v1082_v46 = vld [vmem:[%s2884_s4 + $0x50] sm:$0xff]  ;;  %v1083_v48 = vld [vmem:[%s2884_s4 + $0x58] sm:$0xff] }
  0x49   : > { %2134 = vmatpush3.bf16.msra.mxu0 %v2131_v41  ;;  %1849 = vmatprep.mubr.f32.mxu0 %v768_v51  ;;  %v2802_v41 = vpack.c.bf16 %v1079_v40, %v1078_v39  ;;  %v2822_v49 = vpack.c.bf16 %v1083_v48, %v1082_v46  ;;  %v1085_v51 = vld [vmem:[%s2884_s4 + $0x68] sm:$0xff] }
  0x4a   : > { %2136 = vmatprep.subr.bf16.mxu0 %v2135_v50  ;;  %2195 = vmatprep.subr.bf16.mxu1 %v2282_v32 }
  0x4b   : > { %1771 = vmatmul.mubr.f32.vlgmr.msra.gmra.mrb[0].mxu1 %v2396_v21  ;;  %v738_v21 = vld [vmem:[%s2883_s3 + $0x58] sm:$0xff] }
  0x4c   : > { %1850 = vmatmul.mubr.f32.gmra.mrb[2].mxu0 %v770_v29  ;;  %1773 = vmatprep.mubr.f32.mxu1 %v2488_v5  ;;  %v739_v5 = vld [vmem:[%s2883_s3 + $0x60] sm:$0xff]  ;;  %v1087_v29 = vld [vmem:[%s2884_s4 + $0x78] sm:$0xff] }
  0x4d   : > { %2138 = vmatpush3.bf16.msra.mxu0 %v2135_v50  ;;  %1884 = vmatprep.mubr.msk.f32.mxu0 %vm2593_vm3, %v2461_v54  ;;  %v737_v54 = vld [vmem:[%s2883_s3 + $0x50] sm:$0xff]  ;;  %v1084_v50 = vld [vmem:[%s2884_s4 + $0x60] sm:$0xff] }
  0x4e   : > { %2140 = vmatprep.subr.bf16.mxu0 %v2139_v36  ;;  %v2151_v61 = vpack.c.bf16 %v738_v21, %v737_v54  ;;  %2197 = vmatpush3.bf16.msra.mxu1 %v2772_v33  ;;  %v2832_v52 = vpack.c.bf16 %v1085_v51, %v1084_v50 }
  0x4f   : > { %1774 = vmatmul.mubr.f32.gmra.mrb[2].mxu1 %v2496_v8  ;;  %v2155_v8 = vpack.c.bf16 %v740_v62, %v739_v5  ;;  %2198 = vmatprep.subr.bf16.mxu1 %v2282_v32 }
  0x50   : > { %1960 = vmatprep.mubr.msk.f32.mxu1 %vm2283_vm4, %v2284_v55 }
  0x51   : > { %2142 = vmatpush3.bf16.msra.mxu0 %v2139_v36  ;;  %v2217_v36 = vpack.c.bf16 %v1087_v29, %v1086_v53 }
  0x52   : > { %2144 = vmatprep.subr.bf16.mxu0 %v2143_v57 }
  0x55   : > { %2146 = vmatpush3.bf16.msra.mxu0 %v2143_v57 }
  0x56   : > { %2148 = vmatprep.subr.bf16.mxu0 %v2147_v60 }
  0x59   : > { %2150 = vmatpush3.bf16.msra.mxu0 %v2147_v60 }
  0x5a   : > { %2152 = vmatprep.subr.bf16.mxu0 %v2151_v61 }
  0x5d   : > { %2154 = vmatpush3.bf16.msra.mxu0 %v2151_v61 }
  0x5e   : > { %2156 = vmatprep.subr.bf16.mxu0 %v2155_v8 }
  0x61   : > { %2158 = vmatpush3.bf16.msra.mxu0 %v2155_v8 }
  0x62   : > { %2160 = vmatprep.subr.bf16.mxu0 %v2159_v0 }
  0x65   : > { %2162 = vmatpush3.bf16.msra.mxu0 %v2159_v0 }
  0x66   : > { %2164 = vmatprep.subr.bf16.mxu0 %v2163_v3 }
  0x68   : > { %1885 = vmatmul.mubr.f32.vlgmr.msra.gmra.mrb[0].mxu0 %v2492_v6  ;;  %v2175_v6 = vpack.c.bf16 %v1528_v15, %v1527_v14 }
  0x69   : > { %2166 = vmatpush3.bf16.msra.mxu0 %v2163_v3  ;;  %1887 = vmatprep.mubr.f32.mxu0 %v2499_v9  ;;  %v1529_v9 = vld [vmem:[%s2883_s3 + $0x140] sm:$0xff] }
  0x6a   : > { %2168 = vmatprep.subr.bf16.mxu0 %v2167_v10  ;;  %v2179_v16 = vpack.c.bf16 %v1530_v17, %v1529_v9 }
  0x6c   : > { %1888 = vmatmul.mubr.f32.gmra.mrb[2].mxu0 %v2526_v30  ;;  %v1531_v30 = vld [vmem:[%s2883_s3 + $0x150] sm:$0xff] }
  0x6d   : > { %2170 = vmatpush3.bf16.msra.mxu0 %v2167_v10  ;;  %1922 = vmatprep.mubr.f32.mxu0 %v2518_v22  ;;  %v1532_v22 = vld [vmem:[%s2883_s3 + $0x158] sm:$0xff] }
  0x6e   : > { %2172 = vmatprep.subr.bf16.mxu0 %v2171_v13  ;;  %v2183_v18 = vpack.c.bf16 %v1532_v22, %v1531_v30 }
  0x71   : > { %2174 = vmatpush3.bf16.msra.mxu0 %v2171_v13 }
  0x72   : > { %2176 = vmatprep.subr.bf16.mxu0 %v2175_v6 }
  0x75   : > { %2178 = vmatpush3.bf16.msra.mxu0 %v2175_v6  ;;  %v1247_v6 = vlaneseq }
  0x76   : > { %2180 = vmatprep.subr.bf16.mxu0 %v2179_v16 }
  0x77   : > { %v1248_v9 = vshrl.u32 %v1247_v6, 7 }
  0x79   : > { %2182 = vmatpush3.bf16.msra.mxu0 %v2179_v16  ;;  %v1249_v17 = vsub.s32 0, %v1248_v9 }
  0x7a   : > { %2184 = vmatprep.subr.bf16.mxu0 %v2183_v18 }
  0x7d   : > { %2186 = vmatpush3.bf16.msra.mxu0 %v2183_v18 }
  0x7e   : > { %2188 = vmatprep.subr.bf16.mxu0 %v2187_v23 }
  0x81   : > { %2190 = vmatpush3.bf16.msra.mxu0 %v2187_v23 }
  0x82   : > { %2192 = vmatprep.subr.bf16.mxu0 %v2191_v27 }
  0x85   : > { %2194 = vmatpush3.bf16.msra.mxu0 %v2191_v27 }
  0x88   : > { %1923 = vmatmul.mubr.f32.vlgmr.msra.gmra.mrb[0].mxu0 %v2523_v26  ;;  %v1074_v26 = vld [vmem:[%s2884_s4 + $0x10] sm:$0xff] }
  0x89   : > { %1925 = vmatprep.mubr.f32.mxu0 %v2553_v44  ;;  %v1075_v44 = vld [vmem:[%s2884_s4 + $0x18] sm:$0xff] }
  0x8c   : > { %1926 = vmatmul.mubr.f32.gmra.mrb[2].mxu0 %v2557_v47  ;;  %v2782_v47 = vpack.c.bf16 %v1075_v44, %v1074_v26 }
  0x8e   : > { %2200 = vmatpush3.bf16.msra.mxu1 %v2782_v47 }
  0x8f   : > { %2201 = vmatprep.subr.bf16.mxu1 %v2282_v32 }
  0x92   : > { %2203 = vmatpush3.bf16.msra.mxu1 %v2792_v38 }
  0x93   : > { %2204 = vmatprep.subr.bf16.mxu1 %v2282_v32 }
  0x96   : > { %2206 = vmatpush3.bf16.msra.mxu1 %v2802_v41 }
  0x97   : > { %2207 = vmatprep.subr.bf16.mxu1 %v2282_v32 }
  0x9a   : > { %2209 = vmatpush3.bf16.msra.mxu1 %v2812_v45 }
  0x9b   : > { %2210 = vmatprep.subr.bf16.mxu1 %v2282_v32 }
  0x9e   : > { %2212 = vmatpush3.bf16.msra.mxu1 %v2822_v49 }
  0x9f   : > { %2213 = vmatprep.subr.bf16.mxu1 %v2282_v32 }
  0xa2   : > { %2215 = vmatpush3.bf16.msra.mxu1 %v2832_v52 }
  0xa3   : > { %2216 = vmatprep.subr.bf16.mxu1 %v2282_v32 }
  0xa6   : > { %2218 = vmatpush3.bf16.msra.mxu1 %v2217_v36 }
  0xa7   : > { %1963 = vmatprep.subr.mxu1 %v2284_v55 }
 0x11e   : > { %v1772_v56 = vpop.f32.mrb[0].mxu1 }
 0x11f   : > { %v566_v57 = vpop.f32.mrb[1].mxu1 }
 0x122   : > { %v1775_v58 = vpop.f32.mrb[2].mxu1 }
 0x123   : > { %v576_v59 = vpop.f32.mrb[3].mxu1 }
 0x15b   : > { %v1924_v60 = vpop.f32.mrb[0].mxu0 }
 0x15c   : > { %v2243_v54 = vadd.f32 %v1924_v60, %v1772_v56  ;;  %v1041_v21 = vpop.f32.mrb[1].mxu0 }
 0x15d   : > { %v2244_v61 = vadd.f32 %v1041_v21, %v566_v57 }
 0x15e   : > { %1069 = vst [vmem:[%s336_s12 + $0x8] sm:$0xff] %v2243_v54 }
 0x15f   : > { %1068 = vst [vmem:[%s336_s12] sm:$0xff] %v2244_v61  ;;  %v1927_v5 = vpop.f32.mrb[2].mxu0  ;;  %v1089_v35 = vadd.f32 %v2244_v61, %v2243_v54 }
 0x160   : > { %v2245_v62 = vadd.f32 %v1927_v5, %v1775_v58  ;;  %v1051_v8 = vpop.f32.mrb[3].mxu0 }
 0x161   : > { %v2246_v63 = vadd.f32 %v1051_v8, %v576_v59 }
 0x162   : > { %1071 = vst [vmem:[%s336_s12 + $0x18] sm:$0xff] %v2245_v62 }
 0x163   : > { %1070 = vst [vmem:[%s336_s12 + $0x10] sm:$0xff] %v2246_v63  ;;  %v1090_v0 = vadd.f32 %v2246_v63, %v1089_v35 }
 0x165   : > { %v1091_v1 = vadd.f32 %v2245_v62, %v1090_v0 }
 0x167   : > { %v1092_v2 = vrot.slane %v1091_v1, 4 }
 0x169   : > { %v1093_v3 = vadd.f32 %v1092_v2, %v1091_v1 }
 0x16b   : > { %v1094_v4 = vrot.slane %v1093_v3, 2 }
 0x16d   : > { %v1095_v7 = vadd.f32 %v1094_v4, %v1093_v3 }
 0x16f   : > { %v1096_v10 = vrot.slane %v1095_v7, 1 }
 0x171   : > { %v1097_v11 = vadd.f32 %v1096_v10, %v1095_v7 }
 0x173   : > { %1961 = vmatmul.mubr.f32.vlgmr.msra.gmra.mrb[4].mxu1 %v1097_v11 }
 0x174   : > { %1964 = vmatpush3.msk.msra.mxu1 %vm1173_vm5, %v1088_v12  ;;  %1965 = vmatprep.mubr.msk.f32.mxu1 %vm2283_vm4, %v2284_v55 }
 0x175   : > { %2219 = vmatprep.subr.bf16.mxu1 %v2282_v32 }
 0x246   : > { %v1164_v13 = vpop.f32.mrb[4].mxu1 }
 0x247   : > { %v1168_v14 = vmul.f32 0.0009765625, %v1164_v13  ;;  %1339 = vst.msk [vmem:[%s339_s17] sm:$0x1] %vm1338_vm6, %v1164_v13  ;;  %v1962_v15 = vpop.f32.mrb[5].mxu1 }
 0x249   : > { %1966 = vmatmul.mubr.msk.f32.vlgmr.msra.gmra.mrb[6].mxu1 %vm1169_vm7, %v1168_v14 }
 0x24a   : > { %2221 = vmatpush3.bf16.msra.mxu1 %v2772_v33  ;;  %2000 = vmatprep.mubr.msk.f32.mxu1 %vm2283_vm4, %v2284_v55 }
 0x24b   : > { %2222 = vmatprep.subr.bf16.mxu1 %v2282_v32 }
 0x24e   : > { %2224 = vmatpush3.bf16.msra.mxu1 %v2782_v47 }
 0x24f   : > { %2225 = vmatprep.subr.bf16.mxu1 %v2282_v32 }
 0x252   : > { %2227 = vmatpush3.bf16.msra.mxu1 %v2792_v38 }
 0x253   : > { %2228 = vmatprep.subr.bf16.mxu1 %v2282_v32 }
 0x256   : > { %2230 = vmatpush3.bf16.msra.mxu1 %v2802_v41 }
 0x257   : > { %2231 = vmatprep.subr.bf16.mxu1 %v2282_v32 }
 0x25a   : > { %2233 = vmatpush3.bf16.msra.mxu1 %v2812_v45 }
 0x25b   : > { %2234 = vmatprep.subr.bf16.mxu1 %v2282_v32 }
 0x25e   : > { %2236 = vmatpush3.bf16.msra.mxu1 %v2822_v49 }
 0x25f   : > { %2237 = vmatprep.subr.bf16.mxu1 %v2282_v32 }
 0x262   : > { %2239 = vmatpush3.bf16.msra.mxu1 %v2832_v52 }
 0x263   : > { %2240 = vmatprep.subr.bf16.mxu1 %v2282_v32 }
 0x266   : > { %2242 = vmatpush3.bf16.msra.mxu1 %v2217_v36 }
 0x31c   : > { %v1243_v16 = vpop.f32.mrb[6].mxu1 }
 0x31d   : > { %v1250_v30 = vrot.slane %v1243_v16, %v1249_v17  ;;  %v1967_v22 = vpop.f32.mrb[7].mxu1 }
 0x31f   : > { %v1251_v18 = vsub.f32 %v2244_v61, %v1250_v30  ;;  %v1252_v19 = vsub.f32 %v2243_v54, %v1250_v30  ;;  %v1253_v20 = vsub.f32 %v2246_v63, %v1250_v30  ;;  %v1254_v23 = vsub.f32 %v2245_v62, %v1250_v30 }
 0x321   : > { %v1255_v24 = vmul.f32 %v1251_v18, %v1251_v18  ;;  %v1256_v25 = vmul.f32 %v1252_v19, %v1252_v19  ;;  %v1257_v27 = vmul.f32 %v1253_v20, %v1253_v20  ;;  %v1258_v31 = vmul.f32 %v1254_v23, %v1254_v23 }
 0x323   : > { %v1259_v28 = vadd.f32 %v1256_v25, %v1255_v24 }
 0x325   : > { %v1260_v33 = vadd.f32 %v1259_v28, %v1257_v27 }
 0x327   : > { %v1261_v26 = vadd.f32 %v1260_v33, %v1258_v31 }
 0x329   : > { %v1262_v32 = vrot.slane %v1261_v26, 4 }
 0x32b   : > { %v1263_v44 = vadd.f32 %v1262_v32, %v1261_v26 }
 0x32d   : > { %v1264_v47 = vrot.slane %v1263_v44, 2 }
 0x32f   : > { %v1265_v34 = vadd.f32 %v1264_v47, %v1263_v44 }
 0x331   : > { %v1266_v37 = vrot.slane %v1265_v34, 1 }
 0x333   : > { %v1267_v38 = vadd.f32 %v1266_v37, %v1265_v34 }
 0x335   : > { %2001 = vmatmul.mubr.f32.vlgmr.msra.gmra.mrb[8].mxu1 %v1267_v38 }
 0x408   : > { %v1334_v39 = vpop.f32.mrb[8].mxu1 }
 0x409   : > { %1340 = vst.msk [vmem:[%s342_s21] sm:$0x1] %vm1338_vm6, %v1334_v39  ;;  %v2002_v40 = vpop.f32.mrb[9].mxu1 }
 0x40a PF: > { %s19_s27 = sadd.s32 1, %s2280_s27  }
 0x40b   : > { %p16_p4 = scmp.ge.s32.totalorder %s19_s27, 4  }
 0x40d   :  { %18 = sbr.rel (!%p16_p4) target bundleno = 1 (0x1), region = 105 }

// kernel: tile.23
= control target key start
LH: loop header
LB: loop body
LE: loop exit
PB: predicated region body
PF: predicated region fallthrough
CT: control target
= control target key end

     0   :  { %s40_s0 = inlined_call_operand.vmem [shape: f32[4], index: 0, kind: input, shape index: {}]   ;;  %s41_s1 = inlined_call_operand.vmem [shape: f32[32,4], index: 1, kind: output, shape index: {}]  }
   0x1   :  { %v4_v0 = vld [vmem:[%s40_s0] ss:$0 sm:$0xff] }
   0x2   :  { %5 = vst [vmem:[%s41_s1] sm:$0xff] %v4_v0  ;;  %12 = vst [vmem:[%s41_s1 + $0x8] sm:$0xff] %v4_v0 }
   0x3   :  { %13 = vst [vmem:[%s41_s1 + $0x10] sm:$0xff] %v4_v0  ;;  %14 = vst [vmem:[%s41_s1 + $0x18] sm:$0xff] %v4_v0 }

// kernel: tile.24
= control target key start
LH: loop header
LB: loop body
LE: loop exit
PB: predicated region body
PF: predicated region fallthrough
CT: control target
= control target key end

     0   :  { %s259_s10 = smov 124   ;;  %s260_s11 = smov 116   ;;  %vm3_vm0 = vcmask 31744   ;;  %vm9_vm1 = vcmask 1048544   ;;  %vm15_vm2 = vcmask 1015744   ;;  %vm21_vm3 = vcmask 982944   ;;  %s399_s0 = inlined_call_operand.vmem [shape: f32[32,4], index: 0, kind: input, shape index: {}]   ;;  %s400_s1 = inlined_call_operand.vmem [shape: f32[1,128], index: 1, kind: output, shape index: {}]  }
   0x1   :  { %v197_v0 = vld [vmem:[%s399_s0 + $0x1f] sm:$0x1]   ;;  %v199_v1 = vld [vmem:[%s399_s0 + $0x1d] sm:$0x1]   ;;  %v198_v2 = vld [vmem:[%s399_s0 + $0x1e] sm:$0x1]  }
   0x2   :  { %7 = vrot.lane.b32.xlu0 %v197_v0, %s259_s10  ;;  %19 = vrot.lane.b32.xlu1 %v199_v1, %s260_s11  ;;  %v200_v3 = vld [vmem:[%s399_s0 + $0x1c] sm:$0x1]   ;;  %s261_s16 = smov 120   ;;  %s262_s17 = smov 112   ;;  %v201_v4 = vld [vmem:[%s399_s0 + $0x1b] sm:$0x1]  }
   0x3   :  { %v202_v5 = vld [vmem:[%s399_s0 + $0x1a] sm:$0x1]   ;;  %s263_s22 = smov 108   ;;  %s264_s23 = smov 104   ;;  %v203_v6 = vld [vmem:[%s399_s0 + $0x19] sm:$0x1]  }
   0x4   :  { %v204_v7 = vld [vmem:[%s399_s0 + $0x18] sm:$0x1]   ;;  %s265_s28 = smov 100   ;;  %s266_s29 = smov 96   ;;  %v205_v8 = vld [vmem:[%s399_s0 + $0x17] sm:$0x1]  }
   0x5   :  { %v206_v9 = vld [vmem:[%s399_s0 + $0x16] sm:$0x1]   ;;  %v2_v10 = vld [vmem:[%s399_s0] sm:$0x1]   ;;  %s267_s7 = smov 92   ;;  %s268_s8 = smov 88  }
   0x6   :  { %13 = vrot.lane.b32.xlu0 %v198_v2, %s261_s16  ;;  %25 = vrot.lane.b32.xlu1 %v200_v3, %s262_s17  ;;  %4 = vst.msk [vmem:[#allocation0] sm:$0x1] %vm3_vm0, %v2_v10   ;;  %v207_v11 = vld [vmem:[%s399_s0 + $0x15] sm:$0x1]   ;;  %v208_v12 = vld [vmem:[%s399_s0 + $0x14] sm:$0x1]  }
   0x7   :  { %s269_s13 = smov 84   ;;  %s270_s14 = smov 80   ;;  %v209_v13 = vld [vmem:[%s399_s0 + $0x13] sm:$0x1]   ;;  %v210_v14 = vld [vmem:[%s399_s0 + $0x12] sm:$0x1]  }
   0x8   :  { %s271_s19 = smov 76   ;;  %s272_s20 = smov 72   ;;  %v211_v15 = vld [vmem:[%s399_s0 + $0x11] sm:$0x1]   ;;  %v212_v16 = vld [vmem:[%s399_s0 + $0x10] sm:$0x1]  }
   0x9   :  { %s273_s25 = smov 68   ;;  %s274_s26 = smov 64   ;;  %v213_v17 = vld [vmem:[%s399_s0 + $0xf] sm:$0x1]   ;;  %v214_v18 = vld [vmem:[%s399_s0 + $0xe] sm:$0x1]  }
   0xa   :  { %31 = vrot.lane.b32.xlu0 %v201_v4, %s263_s22  ;;  %37 = vrot.lane.b32.xlu1 %v202_v5, %s264_s23  ;;  %s275_s2 = smov 60   ;;  %s276_s3 = smov 56   ;;  %v215_v19 = vld [vmem:[%s399_s0 + $0xd] sm:$0x1]   ;;  %v216_v20 = vld [vmem:[%s399_s0 + $0xc] sm:$0x1]  }
   0xb   :  { %s278_s9 = smov 48   ;;  %v217_v21 = vld [vmem:[%s399_s0 + $0xb] sm:$0x1]   ;;  %v218_v22 = vld [vmem:[%s399_s0 + $0xa] sm:$0x1]   ;;  %s280_s15 = smov 40  }
   0xc   :  { %v219_v23 = vld [vmem:[%s399_s0 + $0x9] sm:$0x1]   ;;  %v220_v24 = vld [vmem:[%s399_s0 + $0x8] sm:$0x1]   ;;  %s282_s21 = smov 32   ;;  %s284_s27 = smov 24  }
   0xd   :  { %v221_v25 = vld [vmem:[%s399_s0 + $0x7] sm:$0x1]   ;;  %v222_v26 = vld [vmem:[%s399_s0 + $0x6] sm:$0x1]   ;;  %v223_v27 = vld [vmem:[%s399_s0 + $0x5] sm:$0x1]  }
   0xe   :  { %43 = vrot.lane.b32.xlu0 %v203_v6, %s265_s28  ;;  %49 = vrot.lane.b32.xlu1 %v204_v7, %s266_s29  ;;  %v224_v28 = vld [vmem:[%s399_s0 + $0x4] sm:$0x1]   ;;  %s286_s4 = smov 16   ;;  %v225_v29 = vld [vmem:[%s399_s0 + $0x3] sm:$0x1]   ;;  %s288_s10 = smov 8  }
   0xf   :  { %v226_v30 = vld [vmem:[%s399_s0 + $0x2] sm:$0x1]   ;;  %v227_v31 = vld [vmem:[%s399_s0 + $0x1] sm:$0x1]   ;;  %s289_s0 = smov 4   ;;  %vm27_vm4 = vcmask 950144  }
  0x10   :  { %vm33_vm5 = vcmask 917344   ;;  %vm39_vm6 = vcmask 884544   ;;  %vm45_vm7 = vcmask 851744   ;;  %vm51_vm8 = vcmask 818944  }
  0x11   :  { %vm57_vm9 = vcmask 786144   ;;  %vm63_vm10 = vcmask 753344   ;;  %vm69_vm11 = vcmask 720544   ;;  %vm75_vm12 = vcmask 687744  }
  0x12   :  { %55 = vrot.lane.b32.xlu0 %v205_v8, %s267_s7  ;;  %61 = vrot.lane.b32.xlu1 %v206_v9, %s268_s8  ;;  %s277_s8 = smov 52   ;;  %vm81_vm13 = vcmask 654944   ;;  %vm87_vm14 = vcmask 622144   ;;  %vm93_vm15 = vcmask 589344   ;;  %vm99_vm0 = vcmask 556544  }
  0x16   :  { %67 = vrot.lane.b32.xlu0 %v207_v11, %s269_s13  ;;  %73 = vrot.lane.b32.xlu1 %v208_v12, %s270_s14  ;;  %s279_s14 = smov 44  }
  0x1a   :  { %79 = vrot.lane.b32.xlu0 %v209_v13, %s271_s19  ;;  %85 = vrot.lane.b32.xlu1 %v210_v14, %s272_s20  ;;  %s281_s20 = smov 36  }
  0x1e   :  { %91 = vrot.lane.b32.xlu0 %v211_v15, %s273_s25  ;;  %97 = vrot.lane.b32.xlu1 %v212_v16, %s274_s26  ;;  %s283_s26 = smov 28  }
  0x22   :  { %103 = vrot.lane.b32.xlu0 %v213_v17, %s275_s2  ;;  %109 = vrot.lane.b32.xlu1 %v214_v18, %s276_s3  ;;  %s285_s3 = smov 20  }
  0x26   :  { %115 = vrot.lane.b32.xlu0 %v215_v19, %s277_s8  ;;  %121 = vrot.lane.b32.xlu1 %v216_v20, %s278_s9  ;;  %s287_s9 = smov 12  }
  0x2a   :  { %127 = vrot.lane.b32.xlu0 %v217_v21, %s279_s14  ;;  %133 = vrot.lane.b32.xlu1 %v218_v22, %s280_s15 }
  0x2e   :  { %139 = vrot.lane.b32.xlu0 %v219_v23, %s281_s20  ;;  %145 = vrot.lane.b32.xlu1 %v220_v24, %s282_s21 }
  0x32   :  { %151 = vrot.lane.b32.xlu0 %v221_v25, %s283_s26  ;;  %157 = vrot.lane.b32.xlu1 %v222_v26, %s284_s27 }
  0x36   :  { %163 = vrot.lane.b32.xlu0 %v223_v27, %s285_s3  ;;  %169 = vrot.lane.b32.xlu1 %v224_v28, %s286_s4 }
  0x3a   :  { %175 = vrot.lane.b32.xlu0 %v225_v29, %s287_s9  ;;  %181 = vrot.lane.b32.xlu1 %v226_v30, %s288_s10 }
  0x3e   :  { %187 = vrot.lane.b32.xlu0 %v227_v31, %s289_s0 }
  0x74   :  { %v8_v32 = vpop.permute.xlu0 %7   ;;  %v20_v33 = vpop.permute.xlu1 %19  }
  0x75   :  { %10 = vst.msk [vmem:[#allocation0] sm:$0x1] %vm9_vm1, %v8_v32   ;;  %vm105_vm1 = vcmask 523744  }
  0x78   :  { %v14_v34 = vpop.permute.xlu0 %13   ;;  %v26_v35 = vpop.permute.xlu1 %25  }
  0x79   :  { %16 = vst.msk [vmem:[#allocation0] sm:$0x1] %vm15_vm2, %v14_v34   ;;  %vm111_vm2 = vcmask 490944  }
  0x7a   :  { %22 = vst.msk [vmem:[#allocation0] sm:$0x1] %vm21_vm3, %v20_v33   ;;  %vm117_vm3 = vcmask 458144  }
  0x7b   :  { %28 = vst.msk [vmem:[#allocation0] sm:$0x1] %vm27_vm4, %v26_v35   ;;  %vm123_vm4 = vcmask 425344  }
  0x7c   :  { %v32_v36 = vpop.permute.xlu0 %31   ;;  %v38_v37 = vpop.permute.xlu1 %37  }
  0x7d   :  { %34 = vst.msk [vmem:[#allocation0] sm:$0x1] %vm33_vm5, %v32_v36   ;;  %vm129_vm5 = vcmask 392544  }
  0x7e   :  { %40 = vst.msk [vmem:[#allocation0] sm:$0x1] %vm39_vm6, %v38_v37   ;;  %vm135_vm6 = vcmask 359744  }
  0x80   :  { %v44_v38 = vpop.permute.xlu0 %43   ;;  %v50_v39 = vpop.permute.xlu1 %49  }
  0x81   :  { %46 = vst.msk [vmem:[#allocation0] sm:$0x1] %vm45_vm7, %v44_v38   ;;  %vm141_vm7 = vcmask 326944  }
  0x82   :  { %52 = vst.msk [vmem:[#allocation0] sm:$0x1] %vm51_vm8, %v50_v39   ;;  %vm147_vm8 = vcmask 294144  }
  0x84   :  { %v56_v40 = vpop.permute.xlu0 %55   ;;  %v62_v41 = vpop.permute.xlu1 %61  }
  0x85   :  { %58 = vst.msk [vmem:[#allocation0] sm:$0x1] %vm57_vm9, %v56_v40   ;;  %vm153_vm9 = vcmask 261344  }
  0x86   :  { %64 = vst.msk [vmem:[#allocation0] sm:$0x1] %vm63_vm10, %v62_v41   ;;  %vm159_vm10 = vcmask 228544  }
  0x88   :  { %v68_v42 = vpop.permute.xlu0 %67   ;;  %v74_v43 = vpop.permute.xlu1 %73  }
  0x89   :  { %70 = vst.msk [vmem:[#allocation0] sm:$0x1] %vm69_vm11, %v68_v42   ;;  %vm165_vm11 = vcmask 195744  }
  0x8a   :  { %76 = vst.msk [vmem:[#allocation0] sm:$0x1] %vm75_vm12, %v74_v43   ;;  %vm171_vm12 = vcmask 162944  }
  0x8c   :  { %v80_v44 = vpop.permute.xlu0 %79   ;;  %v86_v45 = vpop.permute.xlu1 %85  }
  0x8d   :  { %82 = vst.msk [vmem:[#allocation0] sm:$0x1] %vm81_vm13, %v80_v44   ;;  %vm177_vm13 = vcmask 130144  }
  0x8e   :  { %88 = vst.msk [vmem:[#allocation0] sm:$0x1] %vm87_vm14, %v86_v45   ;;  %vm183_vm14 = vcmask 97344  }
  0x90   :  { %v92_v46 = vpop.permute.xlu0 %91   ;;  %v98_v47 = vpop.permute.xlu1 %97  }
  0x91   :  { %94 = vst.msk [vmem:[#allocation0] sm:$0x1] %vm93_vm15, %v92_v46   ;;  %vm189_vm15 = vcmask 64544  }
  0x92   :  { %100 = vst.msk [vmem:[#allocation0] sm:$0x1] %vm99_vm0, %v98_v47  }
  0x94   :  { %v104_v48 = vpop.permute.xlu0 %103   ;;  %v110_v49 = vpop.permute.xlu1 %109  }
  0x95   :  { %106 = vst.msk [vmem:[#allocation0] sm:$0x1] %vm105_vm1, %v104_v48  }
  0x96   :  { %112 = vst.msk [vmem:[#allocation0] sm:$0x1] %vm111_vm2, %v110_v49  }
  0x98   :  { %v116_v50 = vpop.permute.xlu0 %115   ;;  %v122_v51 = vpop.permute.xlu1 %121  }
  0x99   :  { %118 = vst.msk [vmem:[#allocation0] sm:$0x1] %vm117_vm3, %v116_v50  }
  0x9a   :  { %124 = vst.msk [vmem:[#allocation0] sm:$0x1] %vm123_vm4, %v122_v51  }
  0x9c   :  { %v128_v52 = vpop.permute.xlu0 %127   ;;  %v134_v53 = vpop.permute.xlu1 %133  }
  0x9d   :  { %130 = vst.msk [vmem:[#allocation0] sm:$0x1] %vm129_vm5, %v128_v52  }
  0x9e   :  { %136 = vst.msk [vmem:[#allocation0] sm:$0x1] %vm135_vm6, %v134_v53  }
  0xa0   :  { %v140_v54 = vpop.permute.xlu0 %139   ;;  %v146_v55 = vpop.permute.xlu1 %145  }
  0xa1   :  { %142 = vst.msk [vmem:[#allocation0] sm:$0x1] %vm141_vm7, %v140_v54  }
  0xa2   :  { %148 = vst.msk [vmem:[#allocation0] sm:$0x1] %vm147_vm8, %v146_v55  }
  0xa4   :  { %v152_v56 = vpop.permute.xlu0 %151   ;;  %v158_v57 = vpop.permute.xlu1 %157  }
  0xa5   :  { %154 = vst.msk [vmem:[#allocation0] sm:$0x1] %vm153_vm9, %v152_v56  }
  0xa6   :  { %160 = vst.msk [vmem:[#allocation0] sm:$0x1] %vm159_vm10, %v158_v57  }
  0xa8   :  { %v164_v58 = vpop.permute.xlu0 %163   ;;  %v170_v59 = vpop.permute.xlu1 %169  }
  0xa9   :  { %166 = vst.msk [vmem:[#allocation0] sm:$0x1] %vm165_vm11, %v164_v58  }
  0xaa   :  { %172 = vst.msk [vmem:[#allocation0] sm:$0x1] %vm171_vm12, %v170_v59  }
  0xac   :  { %v176_v60 = vpop.permute.xlu0 %175   ;;  %v182_v61 = vpop.permute.xlu1 %181  }
  0xad   :  { %178 = vst.msk [vmem:[#allocation0] sm:$0x1] %vm177_vm13, %v176_v60  }
  0xae   :  { %184 = vst.msk [vmem:[#allocation0] sm:$0x1] %vm183_vm14, %v182_v61  }
  0xb0   :  { %v188_v62 = vpop.permute.xlu0 %187  }
  0xb1   :  { %190 = vst.msk [vmem:[#allocation0] sm:$0x1] %vm189_vm15, %v188_v62  }
  0xb8   :  { %v194_v63 = vld [vmem:[#allocation0] sm:$0x1] }
  0xb9   :  { %196 = vst [vmem:[%s400_s1] sm:$0x1] %v194_v63 }

// kernel: decoder_block_forward.5
= control target key start
LH: loop header
LB: loop body
LE: loop exit
PB: predicated region body
PF: predicated region fallthrough
CT: control target
= control target key end

     0   :  { %s1644_s27 = smov 0   ;;  %s1962_s0 = inlined_call_operand.vmem [shape: f32[2,32,128], index: 0, kind: input, shape index: {}]   ;;  %s1963_s1 = inlined_call_operand.vmem [shape: f32[1,128], index: 1, kind: input, shape index: {}]   ;;  %s1964_s2 = inlined_call_operand.vmem [shape: f32[1,128], index: 2, kind: input, shape index: {}]   ;;  %s1965_s3 = inlined_call_operand.vmem [shape: f32[3,128,128], index: 3, kind: input, shape index: {}]   ;;  %s1966_s4 = inlined_call_operand.vmem [shape: f32[128,4], index: 4, kind: input, shape index: {}]   ;;  %s1967_s5 = inlined_call_operand.vmem [shape: f32[4,128], index: 5, kind: input, shape index: {}]   ;;  %s1968_s6 = inlined_call_operand.vmem [shape: f32[2,32,128], index: 6, kind: output, shape index: {0}]   ;;  %s1969_s7 = inlined_call_operand.vmem [shape: f32[2,1,4], index: 7, kind: output, shape index: {1}]   ;;  %s1970_s8 = inlined_call_operand.vmem [shape: f32[2,1,4], index: 8, kind: output, shape index: {2}]  }
   0x1 LB: > { %s1089_s28 = sadd.s32 4294967295, %s1594_s27   ;;  %p1093_p0 = scmp.ge.s32.totalorder %s1594_s27, 1  ;;  %s1594_s27 = sphi %s1644_s27, %s19_s27  }
   0x2   : > { %p267_p1 = scmp.lt.s32.totalorder %s1594_s27, 3 }
   0x4   : > { %p268_p2 = pnand %p1093_p0, %p267_p1 }
   0x5   : > { %v1100_v0 = vld [vmem:[%s1965_s3 + $0x80] sm:$0xff] (!%p268_p2)  ;;  %v1101_v1 = vld [vmem:[%s1965_s3 + $0x88] sm:$0xff] (!%p268_p2)  ;;  %v1102_v2 = vld [vmem:[%s1965_s3 + $0x90] sm:$0xff] (!%p268_p2)  ;;  %p307_p3 = scmp.lt.s32.totalorder (!%p268_p2), %s1089_s28, 1  ;;  %v1596_v8 = vmov (!%p268_p2), 0.0|0.0   ;;  %vm357_vm0 = vcmask (!%p268_p2), 1040384  }
   0x6   : > { %271 = sbr.rel (%p268_p2) target bundleno = 1000 (0x3e8), region = 44  ;;  %v1425_v3 = vpack.c.bf16 (!%p268_p2), %v1101_v1, %v1100_v0  ;;  %v1103_v4 = vld [vmem:[%s1965_s3 + $0x98] sm:$0xff] (!%p268_p2)  ;;  %v1104_v6 = vld [vmem:[%s1965_s3 + $0xa0] sm:$0xff] (!%p268_p2)  ;;  %v1105_v7 = vld [vmem:[%s1965_s3 + $0xa8] sm:$0xff] (!%p268_p2)  ;;  %1521 = vmatprep.subr.bf16.mxu1 (!%p268_p2), %v1596_v8  ;;  %vm407_vm1 = vcmask (!%p268_p2), 1046528   ;;  %vm608_vm2 = vcmask (!%p268_p2), 1045504  }
   0x7   : > { %v1429_v5 = vpack.c.bf16 (!%p268_p2), %v1103_v4, %v1102_v2  ;;  %v1433_v9 = vpack.c.bf16 (!%p268_p2), %v1105_v7, %v1104_v6  ;;  %v1106_v10 = vld [vmem:[%s1965_s3 + $0xb0] sm:$0xff] (!%p268_p2)  ;;  %v1107_v11 = vld [vmem:[%s1965_s3 + $0xb8] sm:$0xff] (!%p268_p2)  ;;  %v1098_v12 = vld [vmem:[%s1963_s1] ss:$0 sm:$0xff] (!%p268_p2)  ;;  %vm1597_vm4 = vmmov (!%p268_p2), 0   ;;  %vm816_vm5 = vcmask (!%p268_p2), 1043456  }
   0x8   : > { %1426 = vmatprep.subr.bf16.mxu0 (!%p268_p2), %v1425_v3  ;;  %v1099_v15 = vld [vmem:[%s1964_s2] ss:$0 sm:$0xff] (!%p268_p2)  ;;  %v1437_v20 = vpack.c.bf16 (!%p268_p2), %v1107_v11, %v1106_v10  ;;  %v1109_v24 = vld [vmem:[%s1965_s3 + $0xc8] sm:$0xff] (!%p268_p2)  ;;  %v1110_v34 = vld [vmem:[%s1965_s3 + $0xd0] sm:$0xff] (!%p268_p2)  ;;  %vm981_vm6 = vcmask (!%p268_p2), 24576   ;;  %vm812_vm7 = vcmask (!%p268_p2), 31744  }
   0x9   : > { %1428 = vmatpush3.bf16.msra.mxu0 (!%p268_p2), %v1425_v3  ;;  %v1108_v23 = vld [vmem:[%s1965_s3 + $0xc0] sm:$0xff] (!%p268_p2)  ;;  %v1111_v35 = vld [vmem:[%s1965_s3 + $0xd8] sm:$0xff] (!%p268_p2)  ;;  %v1113_v45 = vld [vmem:[%s1965_s3 + $0xe8] sm:$0xff] (!%p268_p2) }
   0xa   : > { %1430 = vmatprep.subr.bf16.mxu0 (!%p268_p2), %v1429_v5  ;;  %v1441_v30 = vpack.c.bf16 (!%p268_p2), %v1109_v24, %v1108_v23  ;;  %v1445_v42 = vpack.c.bf16 (!%p268_p2), %v1111_v35, %v1110_v34  ;;  %v1112_v43 = vld [vmem:[%s1965_s3 + $0xe0] sm:$0xff] (!%p268_p2)  ;;  %v716_v49 = vld [vmem:[%s1966_s4 + $0x8] sm:$0xff] (!%p268_p2)  ;;  %v717_v50 = vld [vmem:[%s1966_s4 + $0x10] sm:$0xff] (!%p268_p2) }
   0xb   : > { %v715_v48 = vld [vmem:[%s1966_s4] sm:$0xff] (!%p268_p2)  ;;  %v718_v51 = vld [vmem:[%s1966_s4 + $0x18] sm:$0xff] (!%p268_p2)  ;;  %v1449_v53 = vpack.c.bf16 (!%p268_p2), %v1113_v45, %v1112_v43  ;;  %v1114_v57 = vld [vmem:[%s1965_s3 + $0xf0] sm:$0xff] (!%p268_p2) }
   0xc   : > { %v1734_v52 = vpack.c.bf16 (!%p268_p2), %v716_v49, %v715_v48  ;;  %v1115_v58 = vld [vmem:[%s1965_s3 + $0xf8] sm:$0xff] (!%p268_p2)  ;;  %v1752_v62 = vpack.c.bf16 (!%p268_p2), %v718_v51, %v717_v50  ;;  %v719_v63 = vld [vmem:[%s1966_s4 + $0x20] sm:$0xff] (!%p268_p2)  ;;  %v720_v0 = vld [vmem:[%s1966_s4 + $0x28] sm:$0xff] (!%p268_p2) }
   0xd   : > { %s1972_s28 = smov (!%p307_p3, %s1089_s28), 1  ;;  %1432 = vmatpush3.bf16.msra.mxu0 %v1429_v5  ;;  %v1453_v3 = vpack.c.bf16 %v1115_v58, %v1114_v57  ;;  %v372_v4 = vld [vmem:[%s1965_s3] sm:$0xff]  ;;  %v373_v5 = vld [vmem:[%s1965_s3 + $0x8] sm:$0xff]  ;;  %v1776_v6 = vpack.c.bf16 %v720_v0, %v719_v63  ;;  %v374_v11 = vld [vmem:[%s1965_s3 + $0x10] sm:$0xff] }
   0xe   : > { %s1138_s19 = sshll.u32 %s1972_s28, 5  ;;  %1434 = vmatprep.subr.bf16.mxu0 %v1433_v9  ;;  %1523 = vmatpush3.bf16.msra.mxu1 %v1734_v52  ;;  %vm1116_vm3 = vmneg %vm357_vm0  ;;  %v380_v24 = vld [vmem:[%s1965_s3 + $0x40] sm:$0xff]  ;;  %v387_v34 = vld [vmem:[%s1965_s3 + $0x78] sm:$0xff]  ;;  %s319_s15 = scalar_lea.vmem %s1969_s7, %s1972_s28 }
   0xf   : > { %s311_s26 = scalar_lea.vmem %s1962_s0, %s1138_s19  ;;  %1524 = vmatprep.subr.bf16.mxu1 %v1596_v8  ;;  %v1125_v50 = vld [vmem:[%s1965_s3 + $0x138] sm:$0xff]  ;;  %v1126_v51 = vld [vmem:[%s1965_s3 + $0x140] sm:$0xff]  ;;  %v1128_v57 = vld [vmem:[%s1965_s3 + $0x150] sm:$0xff]  ;;  %s316_s11 = scalar_lea.vmem %s1968_s6, %s1138_s19 }
  0x10   : > { %v323_v13 = vld [vmem:[%s311_s26] sm:$0xff]  ;;  %v324_v14 = vld [vmem:[%s311_s26 + $0x8] sm:$0xff]  ;;  %v325_v18 = vld [vmem:[%s311_s26 + $0x10] sm:$0xff]  ;;  %s322_s18 = scalar_lea.vmem %s1970_s8, %s1972_s28 }
  0x11   : > { %v334_v16 = vmul.f32 %v1098_v12, %v323_v13  ;;  %v335_v17 = vmul.f32 %v1098_v12, %v324_v14  ;;  %v336_v19 = vmul.f32 %v1098_v12, %v325_v18  ;;  %v326_v28 = vld [vmem:[%s311_s26 + $0x18] sm:$0xff]  ;;  %1436 = vmatpush3.bf16.msra.mxu0 %v1433_v9  ;;  %v1457_v9 = vpack.c.bf16 %v373_v5, %v372_v4  ;;  %v377_v18 = vld [vmem:[%s1965_s3 + $0x28] sm:$0xff]  ;;  %v1132_v0 = vld [vmem:[%s1965_s3 + $0x170] sm:$0xff] }
  0x12   : > { %v337_v29 = vmul.f32 %v1098_v12, %v326_v28  ;;  %1438 = vmatprep.subr.bf16.mxu0 %v1437_v20  ;;  %1526 = vmatpush3.bf16.msra.mxu1 %v1752_v62  ;;  %v375_v12 = vld [vmem:[%s1965_s3 + $0x18] sm:$0xff] }
  0x13   : > { %v345_v21 = vadd.f32 %v1099_v15, %v334_v16  ;;  %v346_v22 = vadd.f32 %v1099_v15, %v335_v17  ;;  %v347_v25 = vadd.f32 %v1099_v15, %v336_v19  ;;  %1527 = vmatprep.subr.bf16.mxu1 %v1596_v8  ;;  %v376_v17 = vld [vmem:[%s1965_s3 + $0x20] sm:$0xff]  ;;  %v383_v28 = vld [vmem:[%s1965_s3 + $0x58] sm:$0xff] }
  0x14   : > { %v348_v36 = vadd.f32 %v1099_v15, %v337_v29  ;;  %v1461_v15 = vpack.c.bf16 %v375_v12, %v374_v11  ;;  %v726_v11 = vld [vmem:[%s1966_s4 + $0x58] sm:$0xff] }
  0x15   : > { %v349_v26 = vmax.f32 %v345_v21, 0.0  ;;  %v350_v27 = vmax.f32 %v346_v22, 0.0  ;;  %v351_v33 = vmax.f32 %v347_v25, 0.0  ;;  %1440 = vmatpush3.bf16.msra.mxu0 %v1437_v20  ;;  %v1465_v20 = vpack.c.bf16 %v377_v18, %v376_v17  ;;  %v378_v21 = vld [vmem:[%s1965_s3 + $0x30] sm:$0xff]  ;;  %v379_v22 = vld [vmem:[%s1965_s3 + $0x38] sm:$0xff]  ;;  %v381_v25 = vld [vmem:[%s1965_s3 + $0x48] sm:$0xff] }
  0x16   : > { %v352_v41 = vmax.f32 %v348_v36, 0.0  ;;  %1442 = vmatprep.subr.bf16.mxu0 %v1441_v30  ;;  %1529 = vmatpush3.bf16.msra.mxu1 %v1776_v6  ;;  %v1469_v23 = vpack.c.bf16 %v379_v22, %v378_v21  ;;  %v1118_v36 = vld [vmem:[%s1965_s3 + $0x100] sm:$0xff]  ;;  %v730_v17 = vld [vmem:[%s1966_s4 + $0x78] sm:$0xff] }
  0x17   : > { %v1697_v31 = vrot.slane %v349_v26, 7  ;;  %v359_v32 = vrot.slane %v350_v27, 7  ;;  %v361_v44 = vrot.slane %v351_v33, 7  ;;  %1530 = vmatprep.subr.bf16.mxu1 %v1596_v8  ;;  %v1473_v26 = vpack.c.bf16 %v381_v25, %v380_v24  ;;  %v382_v27 = vld [vmem:[%s1965_s3 + $0x50] sm:$0xff] }
  0x18   : > { %v363_v47 = vrot.slane %v352_v41, 7  ;;  %v1477_v29 = vpack.c.bf16 %v383_v28, %v382_v27  ;;  %v386_v33 = vld [vmem:[%s1965_s3 + $0x70] sm:$0xff] }
  0x19   : > { %v1707_v37 = vsel %vm357_vm0, %v1697_v31, %v359_v32  ;;  %v1711_v38 = vsel %vm357_vm0, 0.0, %v1697_v31  ;;  %1444 = vmatpush3.bf16.msra.mxu0 %v1441_v30  ;;  %v1737_v54 = vsel %vm357_vm0, %v359_v32, %v361_v44  ;;  %v384_v30 = vld [vmem:[%s1965_s3 + $0x60] sm:$0xff]  ;;  %v1485_v35 = vpack.c.bf16 %v387_v34, %v386_v33  ;;  %v1120_v41 = vld [vmem:[%s1965_s3 + $0x110] sm:$0xff] }
  0x1a   : > { %v408_v39 = vrot.slane %v1711_v38, 1  ;;  %v409_v40 = vrot.slane %v1707_v37, 1  ;;  %1446 = vmatprep.subr.bf16.mxu0 %v1445_v42  ;;  %v1740_v55 = vsel %vm357_vm0, %v361_v44, %v363_v47  ;;  %v371_v56 = vsel %vm357_vm0, %v363_v47, 0.0  ;;  %v1123_v47 = vld [vmem:[%s1965_s3 + $0x128] sm:$0xff]  ;;  %v731_v33 = vld [vmem:[%s1967_s5] sm:$0xf] }
  0x1b   : > { %v612_v59 = vrot.slane %v1737_v54, 2  ;;  %v614_v60 = vrot.slane %v1740_v55, 2  ;;  %v616_v61 = vrot.slane %v371_v56, 2  ;;  %v411_v7 = vrot.slane %v1737_v54, 1 }
  0x1c   : > { %v410_v46 = vsel %vm407_vm1, %v408_v39, %v409_v40  ;;  %v413_v10 = vrot.slane %v1740_v55, 1  ;;  %v415_v14 = vrot.slane %v371_v56, 1  ;;  %v1119_v39 = vld [vmem:[%s1965_s3 + $0x108] sm:$0xff]  ;;  %v609_v44 = vrot.slane %v1711_v38, 2  ;;  %v1124_v38 = vld [vmem:[%s1965_s3 + $0x130] sm:$0xff] }
  0x1d   : > { %1268 = vmatprep.mubr.f32.mxu0 %v410_v46  ;;  %1448 = vmatpush3.bf16.msra.mxu0 %v1445_v42  ;;  %v1764_v1 = vsel %vm608_vm2, %v612_v59, %v614_v60  ;;  %v1767_v2 = vsel %vm608_vm2, %v614_v60, %v616_v61  ;;  %v412_v13 = vsel %vm407_vm1, %v409_v40, %v411_v7  ;;  %v1121_v42 = vld [vmem:[%s1965_s3 + $0x118] sm:$0xff]  ;;  %v610_v45 = vrot.slane %v1707_v37, 2  ;;  %v1122_v46 = vld [vmem:[%s1965_s3 + $0x120] sm:$0xff]  ;;  %v1131_v61 = vld [vmem:[%s1965_s3 + $0x168] sm:$0xff] }
  0x1e   : > { %1450 = vmatprep.subr.bf16.mxu0 %v1449_v53  ;;  %v414_v16 = vsel %vm407_vm1, %v411_v7, %v413_v10  ;;  %v416_v19 = vsel %vm407_vm1, %v413_v10, %v415_v14  ;;  %v1489_v40 = vpack.c.bf16 %v1119_v39, %v1118_v36  ;;  %v1493_v43 = vpack.c.bf16 %v1121_v42, %v1120_v41  ;;  %v1130_v60 = vld [vmem:[%s1965_s3 + $0x160] sm:$0xff]  ;;  %v721_v7 = vld [vmem:[%s1966_s4 + $0x30] sm:$0xff]  ;;  %v728_v14 = vld [vmem:[%s1966_s4 + $0x68] sm:$0xff] }
  0x1f   : > { %v1497_v48 = vpack.c.bf16 %v1123_v47, %v1122_v46  ;;  %v611_v49 = vsel %vm608_vm2, %v609_v44, %v610_v45  ;;  %v1513_v63 = vpack.c.bf16 %v1131_v61, %v1130_v60  ;;  %v613_v5 = vsel %vm608_vm2, %v610_v45, %v612_v59  ;;  %v724_v59 = vld [vmem:[%s1966_s4 + $0x48] sm:$0xff] }
  0x21   : > { %1452 = vmatpush3.bf16.msra.mxu0 %v1449_v53  ;;  %v1127_v53 = vld [vmem:[%s1965_s3 + $0x148] sm:$0xff] }
  0x22   : > { %1454 = vmatprep.subr.bf16.mxu0 %v1453_v3  ;;  %v1505_v56 = vpack.c.bf16 %v1127_v53, %v1126_v51 }
  0x25   : > { %1456 = vmatpush3.bf16.msra.mxu0 %v1453_v3  ;;  %v1133_v3 = vld [vmem:[%s1965_s3 + $0x178] sm:$0xff] }
  0x26   : > { %1458 = vmatprep.subr.bf16.mxu0 %v1457_v9  ;;  %v1517_v4 = vpack.c.bf16 %v1133_v3, %v1132_v0 }
  0x28   : > { %1269 = vmatmul.mubr.f32.vlgmr.msra.gmra.mrb[0].mxu0 %v412_v13  ;;  %v727_v13 = vld [vmem:[%s1966_s4 + $0x60] sm:$0xff] }
  0x29   : > { %1460 = vmatpush3.bf16.msra.mxu0 %v1457_v9  ;;  %1271 = vmatprep.mubr.f32.mxu0 %v414_v16  ;;  %v722_v9 = vld [vmem:[%s1966_s4 + $0x38] sm:$0xff]  ;;  %v729_v16 = vld [vmem:[%s1966_s4 + $0x70] sm:$0xff] }
  0x2a   : > { %1462 = vmatprep.subr.bf16.mxu0 %v1461_v15  ;;  %v1895_v10 = vpack.c.bf16 %v722_v9, %v721_v7  ;;  %v1543_v18 = vpack.c.bf16 %v730_v17, %v729_v16 }
  0x2c   : > { %1272 = vmatmul.mubr.f32.gmra.mrb[2].mxu0 %v416_v19  ;;  %1532 = vmatpush3.bf16.msra.mxu1 %v1895_v10  ;;  %v1598_v19 = vmov 0.0  }
  0x2d   : > { %1464 = vmatpush3.bf16.msra.mxu0 %v1461_v15  ;;  %1306 = vmatprep.mubr.msk.f32.mxu0 %vm1116_vm3, %v1697_v31  ;;  %v385_v31 = vld [vmem:[%s1965_s3 + $0x68] sm:$0xff]  ;;  %v1540_v15 = vpack.c.bf16 %v728_v14, %v727_v13 }
  0x2e   : > { %1466 = vmatprep.subr.bf16.mxu0 %v1465_v20  ;;  %v1481_v32 = vpack.c.bf16 %v385_v31, %v384_v30  ;;  %1533 = vmatprep.subr.bf16.mxu1 %v1596_v8 }
  0x2f   : > { %1382 = vmatprep.mubr.msk.f32.mxu1 %vm1597_vm4, %v1598_v19 }
  0x31   : > { %1468 = vmatpush3.bf16.msra.mxu0 %v1465_v20 }
  0x32   : > { %1470 = vmatprep.subr.bf16.mxu0 %v1469_v23 }
  0x35   : > { %1472 = vmatpush3.bf16.msra.mxu0 %v1469_v23 }
  0x36   : > { %1474 = vmatprep.subr.bf16.mxu0 %v1473_v26 }
  0x39   : > { %1476 = vmatpush3.bf16.msra.mxu0 %v1473_v26 }
  0x3a   : > { %1478 = vmatprep.subr.bf16.mxu0 %v1477_v29 }
  0x3d   : > { %1480 = vmatpush3.bf16.msra.mxu0 %v1477_v29 }
  0x3e   : > { %1482 = vmatprep.subr.bf16.mxu0 %v1481_v32 }
  0x41   : > { %1484 = vmatpush3.bf16.msra.mxu0 %v1481_v32 }
  0x42   : > { %1486 = vmatprep.subr.bf16.mxu0 %v1485_v35 }
  0x45   : > { %1488 = vmatpush3.bf16.msra.mxu0 %v1485_v35 }
  0x46   : > { %1490 = vmatprep.subr.bf16.mxu0 %v1489_v40 }
  0x48   : > { %1307 = vmatmul.mubr.f32.vlgmr.msra.gmra.mrb[0].mxu0 %v1707_v37  ;;  %v1501_v37 = vpack.c.bf16 %v1125_v50, %v1124_v38 }
  0x49   : > { %1492 = vmatpush3.bf16.msra.mxu0 %v1489_v40  ;;  %1309 = vmatprep.mubr.f32.mxu0 %v1737_v54  ;;  %v723_v54 = vld [vmem:[%s1966_s4 + $0x40] sm:$0xff] }
  0x4a   : > { %1494 = vmatprep.subr.bf16.mxu0 %v1493_v43 }
  0x4c   : > { %1310 = vmatmul.mubr.f32.gmra.mrb[2].mxu0 %v1740_v55  ;;  %v1129_v55 = vld [vmem:[%s1965_s3 + $0x158] sm:$0xff] }
  0x4d   : > { %1496 = vmatpush3.bf16.msra.mxu0 %v1493_v43  ;;  %1344 = vmatprep.mubr.f32.mxu0 %v611_v49  ;;  %v1509_v58 = vpack.c.bf16 %v1129_v55, %v1128_v57 }
  0x4e   : > { %1498 = vmatprep.subr.bf16.mxu0 %v1497_v48 }
  0x51   : > { %1500 = vmatpush3.bf16.msra.mxu0 %v1497_v48 }
  0x52   : > { %1502 = vmatprep.subr.bf16.mxu0 %v1501_v37 }
  0x55   : > { %1504 = vmatpush3.bf16.msra.mxu0 %v1501_v37 }
  0x56   : > { %1506 = vmatprep.subr.bf16.mxu0 %v1505_v56 }
  0x59   : > { %1508 = vmatpush3.bf16.msra.mxu0 %v1505_v56 }
  0x5a   : > { %1510 = vmatprep.subr.bf16.mxu0 %v1509_v58 }
  0x5d   : > { %1512 = vmatpush3.bf16.msra.mxu0 %v1509_v58 }
  0x5e   : > { %1514 = vmatprep.subr.bf16.mxu0 %v1513_v63 }
  0x61   : > { %1516 = vmatpush3.bf16.msra.mxu0 %v1513_v63 }
  0x62   : > { %1518 = vmatprep.subr.bf16.mxu0 %v1517_v4 }
  0x65   : > { %1520 = vmatpush3.bf16.msra.mxu0 %v1517_v4 }
  0x68   : > { %1345 = vmatmul.mubr.f32.vlgmr.msra.gmra.mrb[0].mxu0 %v613_v5 }
  0x69   : > { %1347 = vmatprep.mubr.f32.mxu0 %v1764_v1  ;;  %v1534_v1 = vpack.c.bf16 %v724_v59, %v723_v54 }
  0x6b   : > { %1535 = vmatpush3.bf16.msra.mxu1 %v1534_v1 }
  0x6c   : > { %1348 = vmatmul.mubr.f32.gmra.mrb[2].mxu0 %v1767_v2  ;;  %1536 = vmatprep.subr.bf16.mxu1 %v1596_v8  ;;  %v725_v2 = vld [vmem:[%s1966_s4 + $0x50] sm:$0xff] }
  0x6d   : > { %v1537_v12 = vpack.c.bf16 %v726_v11, %v725_v2 }
  0x6f   : > { %1538 = vmatpush3.bf16.msra.mxu1 %v1537_v12 }
  0x70   : > { %1539 = vmatprep.subr.bf16.mxu1 %v1596_v8 }
  0x73   : > { %1541 = vmatpush3.bf16.msra.mxu1 %v1540_v15 }
  0x74   : > { %1542 = vmatprep.subr.bf16.mxu1 %v1596_v8 }
  0x77   : > { %1544 = vmatpush3.bf16.msra.mxu1 %v1543_v18 }
  0x78   : > { %1385 = vmatprep.subr.mxu1 %v1598_v19 }
 0x13b   : > { %v1346_v20 = vpop.f32.mrb[0].mxu0 }
 0x13c   : > { %712 = vst [vmem:[%s316_s11 + $0x8] sm:$0xff] %v1346_v20  ;;  %v688_v21 = vpop.f32.mrb[1].mxu0 }
 0x13d   : > { %711 = vst [vmem:[%s316_s11] sm:$0xff] %v688_v21  ;;  %v732_v22 = vadd.f32 %v1346_v20, %v688_v21 }
 0x13f   : > { %v1349_v23 = vpop.f32.mrb[2].mxu0 }
 0x140   : > { %714 = vst [vmem:[%s316_s11 + $0x18] sm:$0xff] %v1349_v23  ;;  %v698_v24 = vpop.f32.mrb[3].mxu0 }
 0x141   : > { %713 = vst [vmem:[%s316_s11 + $0x10] sm:$0xff] %v698_v24  ;;  %v733_v25 = vadd.f32 %v732_v22, %v698_v24 }
 0x143   : > { %v734_v26 = vadd.f32 %v1349_v23, %v733_v25 }
 0x145   : > { %v735_v27 = vrot.slane %v734_v26, 4 }
 0x147   : > { %v736_v28 = vadd.f32 %v735_v27, %v734_v26 }
 0x149   : > { %v737_v29 = vrot.slane %v736_v28, 2 }
 0x14b   : > { %v738_v30 = vadd.f32 %v737_v29, %v736_v28 }
 0x14d   : > { %v739_v31 = vrot.slane %v738_v30, 1 }
 0x14f   : > { %v740_v32 = vadd.f32 %v739_v31, %v738_v30 }
 0x151   : > { %1383 = vmatmul.mubr.f32.vlgmr.msra.gmra.mrb[0].mxu1 %v740_v32 }
 0x152   : > { %1386 = vmatpush3.msk.msra.mxu1 %vm816_vm5, %v731_v33  ;;  %1387 = vmatprep.mubr.msk.f32.mxu1 %vm1597_vm4, %v1598_v19 }
 0x153   : > { %1545 = vmatprep.subr.bf16.mxu1 %v1596_v8 }
 0x224   : > { %v807_v34 = vpop.f32.mrb[0].mxu1 }
 0x225   : > { %v811_v35 = vmul.f32 0.0009765625, %v807_v34  ;;  %982 = vst.msk [vmem:[%s319_s15] sm:$0x1] %vm981_vm6, %v807_v34  ;;  %v1384_v36 = vpop.f32.mrb[1].mxu1 }
 0x227   : > { %1388 = vmatmul.mubr.msk.f32.vlgmr.msra.gmra.mrb[2].mxu1 %vm812_vm7, %v811_v35 }
 0x228   : > { %1547 = vmatpush3.bf16.msra.mxu1 %v1734_v52  ;;  %1422 = vmatprep.mubr.msk.f32.mxu1 %vm1597_vm4, %v1598_v19  ;;  %v890_v52 = vlaneseq }
 0x229   : > { %1548 = vmatprep.subr.bf16.mxu1 %v1596_v8 }
 0x22c   : > { %1550 = vmatpush3.bf16.msra.mxu1 %v1752_v62  ;;  %v891_v62 = vshrl.u32 %v890_v52, 7 }
 0x22d   : > { %1551 = vmatprep.subr.bf16.mxu1 %v1596_v8 }
 0x22e   : > { %v892_v39 = vsub.s32 0, %v891_v62 }
 0x230   : > { %1553 = vmatpush3.bf16.msra.mxu1 %v1776_v6 }
 0x231   : > { %1554 = vmatprep.subr.bf16.mxu1 %v1596_v8 }
 0x234   : > { %1556 = vmatpush3.bf16.msra.mxu1 %v1895_v10 }
 0x235   : > { %1557 = vmatprep.subr.bf16.mxu1 %v1596_v8 }
 0x238   : > { %1559 = vmatpush3.bf16.msra.mxu1 %v1534_v1 }
 0x239   : > { %1560 = vmatprep.subr.bf16.mxu1 %v1596_v8 }
 0x23c   : > { %1562 = vmatpush3.bf16.msra.mxu1 %v1537_v12 }
 0x23d   : > { %1563 = vmatprep.subr.bf16.mxu1 %v1596_v8 }
 0x240   : > { %1565 = vmatpush3.bf16.msra.mxu1 %v1540_v15 }
 0x241   : > { %1566 = vmatprep.subr.bf16.mxu1 %v1596_v8 }
 0x244   : > { %1568 = vmatpush3.bf16.msra.mxu1 %v1543_v18 }
 0x2fa   : > { %v886_v6 = vpop.f32.mrb[2].mxu1 }
 0x2fb   : > { %v893_v40 = vrot.slane %v886_v6, %v892_v39  ;;  %v1389_v41 = vpop.f32.mrb[3].mxu1 }
 0x2fd   : > { %v894_v42 = vsub.f32 %v688_v21, %v893_v40  ;;  %v895_v43 = vsub.f32 %v1346_v20, %v893_v40  ;;  %v896_v44 = vsub.f32 %v698_v24, %v893_v40  ;;  %v897_v45 = vsub.f32 %v1349_v23, %v893_v40 }
 0x2ff   : > { %v898_v46 = vmul.f32 %v894_v42, %v894_v42  ;;  %v899_v47 = vmul.f32 %v895_v43, %v895_v43  ;;  %v900_v48 = vmul.f32 %v896_v44, %v896_v44  ;;  %v901_v38 = vmul.f32 %v897_v45, %v897_v45 }
 0x301   : > { %v902_v49 = vadd.f32 %v899_v47, %v898_v46 }
 0x303   : > { %v903_v50 = vadd.f32 %v902_v49, %v900_v48 }
 0x305   : > { %v904_v37 = vadd.f32 %v903_v50, %v901_v38 }
 0x307   : > { %v905_v8 = vrot.slane %v904_v37, 4 }
 0x309   : > { %v906_v51 = vadd.f32 %v905_v8, %v904_v37 }
 0x30b   : > { %v907_v53 = vrot.slane %v906_v51, 2 }
 0x30d   : > { %v908_v56 = vadd.f32 %v907_v53, %v906_v51 }
 0x30f   : > { %v909_v57 = vrot.slane %v908_v56, 1 }
 0x311   : > { %v910_v55 = vadd.f32 %v909_v57, %v908_v56 }
 0x313   : > { %1423 = vmatmul.mubr.f32.vlgmr.msra.gmra.mrb[4].mxu1 %v910_v55 }
 0x3e6   : > { %v977_v58 = vpop.f32.mrb[4].mxu1 }
 0x3e7   : > { %983 = vst.msk [vmem:[%s322_s18] sm:$0x1] %vm981_vm6, %v977_v58  ;;  %v1424_v60 = vpop.f32.mrb[5].mxu1 }
 0x3e8 PF: > { %s19_s27 = sadd.s32 1, %s1594_s27  }
 0x3e9   : > { %p16_p4 = scmp.ge.s32.totalorder %s19_s27, 4  }
 0x3eb   :  { %18 = sbr.rel (!%p16_p4) target bundleno = 1 (0x1), region = 100 }

</bundles_post_ra>
